<compile_context>
chip_gen: v7x
topology: tpu7x:2x2x1
jax: 0.10.0
libtpu: 0.0.40
codegen_flags: <defaults>
</compile_context>

<pallas_src>
import jax
import jax.numpy as jnp
from jax.experimental import pallas as pl
from jax.experimental.pallas import tpu as pltpu

LATENT_DIM = 100
LATENT_PAD = 128          # lane-aligned K for layer 1 (zero-padded)
H1 = 256
H2 = 512
IMAGE_SIZE = 28 * 28      # 784


def _round_up(x, m):
    return ((x + m - 1) // m) * m


def generator_kernel(z_ref, w1_ref, b1_ref, w2_ref, b2_ref, w3_ref, b3_ref,
                     out_ref):
    wdt = w1_ref.dtype  # weight storage dtype (f32 or bf16); accum is f32
    # Layer 1: Linear(latent -> 256) + ReLU
    h = jnp.dot(z_ref[...].astype(wdt), w1_ref[...],
                preferred_element_type=jnp.float32)
    h = jnp.maximum(h + b1_ref[...], 0.0)
    # Layer 2: Linear(256 -> 512) + ReLU
    h = jnp.dot(h.astype(wdt), w2_ref[...],
                preferred_element_type=jnp.float32)
    h = jnp.maximum(h + b2_ref[...], 0.0)
    # Layer 3: Linear(512 -> 784) + Tanh
    h = jnp.dot(h.astype(wdt), w3_ref[...],
                preferred_element_type=jnp.float32)
    out_ref[...] = jnp.tanh(h + b3_ref[...]).astype(out_ref.dtype)


def generator_forward(z, packed_params, *, block_m=None):
    """z: (B, LATENT_DIM) f32.  packed_params: from pack_params()."""
    w1, b1, w2, b2, w3, b3 = packed_params
    batch = z.shape[0]

    # Pad latent (K) dim to 128 lanes; W1 is already row-padded with zeros.
    if z.shape[1] != LATENT_PAD:
        z = jnp.pad(z, ((0, 0), (0, LATENT_PAD - z.shape[1])))

    # Batch tile: 256 is a good default for v6e/v7x MXU rows (128 also fine on
    # v5e); small batches just use one tile rounded up to the 8-sublane rule.
    if block_m is None:
        block_m = min(256, _round_up(batch, 8))
    b_pad = _round_up(batch, block_m)
    if b_pad != batch:
        z = jnp.pad(z, ((0, b_pad - batch), (0, 0)))

    grid = (b_pad // block_m,)

    out = pl.pallas_call(
        generator_kernel,
        out_shape=jax.ShapeDtypeStruct((b_pad, IMAGE_SIZE), jnp.float32),
        grid=grid,
        in_specs=[
            # activations: one batch tile per grid step
            pl.BlockSpec((block_m, LATENT_PAD), lambda i: (i, 0)),
            # weights / biases: constant block index -> loaded once, resident
            pl.BlockSpec((LATENT_PAD, H1), lambda i: (0, 0)),
            pl.BlockSpec((1, H1), lambda i: (0, 0)),
            pl.BlockSpec((H1, H2), lambda i: (0, 0)),
            pl.BlockSpec((1, H2), lambda i: (0, 0)),
            pl.BlockSpec((H2, IMAGE_SIZE), lambda i: (0, 0)),
            pl.BlockSpec((1, IMAGE_SIZE), lambda i: (0, 0)),
        ],
        out_specs=pl.BlockSpec((block_m, IMAGE_SIZE), lambda i: (i, 0)),
        compiler_params=pltpu.CompilerParams(
            dimension_semantics=("parallel",)),  # v7x: shard batch over 2 TCs
    )(z, w1, b1, w2, b2, w3, b3)

    if b_pad != batch:
        out = out[:batch]
    return out


def init_params(key):
    """Deterministic init mimicking PyTorch nn.Linear default:
    U(-1/sqrt(fan_in), 1/sqrt(fan_in)) for weight and bias. Unpadded f32."""
    ks = jax.random.split(key, 6)

    def linear(kw, kb, fan_in, fan_out):
        bound = 1.0 / jnp.sqrt(jnp.float32(fan_in))
        # weight stored as (fan_in, fan_out) so the kernel does x @ W
        w = jax.random.uniform(kw, (fan_in, fan_out), jnp.float32,
                               minval=-bound, maxval=bound)
        b = jax.random.uniform(kb, (1, fan_out), jnp.float32,
                               minval=-bound, maxval=bound)
        return w, b

    w1, b1 = linear(ks[0], ks[1], LATENT_DIM, H1)
    w2, b2 = linear(ks[2], ks[3], H1, H2)
    w3, b3 = linear(ks[4], ks[5], H2, IMAGE_SIZE)
    return (w1, b1, w2, b2, w3, b3)


def pack_params(params, weight_dtype=jnp.float32):
    """Zero-pad W1 rows 100->128 and cast weights to the storage dtype.
    Biases stay f32 (they are added to the f32 accumulator)."""
    w1, b1, w2, b2, w3, b3 = params
    w1p = jnp.pad(w1, ((0, LATENT_PAD - LATENT_DIM), (0, 0)))
    return (w1p.astype(weight_dtype), b1.astype(jnp.float32),
            w2.astype(weight_dtype), b2.astype(jnp.float32),
            w3.astype(weight_dtype), b3.astype(jnp.float32))


def reference_forward(z, packed_params):
    """Pure-JAX reference on the (padded) packed params, promoted to f32."""
    w1, b1, w2, b2, w3, b3 = [p.astype(jnp.float32) for p in packed_params]
    zp = jnp.pad(z, ((0, 0), (0, w1.shape[0] - z.shape[1])))
    h = jnp.maximum(zp @ w1 + b1, 0.0)
    h = jnp.maximum(h @ w2 + b2, 0.0)
    return jnp.tanh(h @ w3 + b3)


if __name__ == "__main__":
    key = jax.random.PRNGKey(0)
    k_z, k_z_big, k_p = jax.random.split(key, 3)

    params = init_params(k_p)

    # 1) Module-spec shapes: z = torch.randn(16, latent_dim), f32 weights.
    z = jax.random.normal(k_z, (16, LATENT_DIM), dtype=jnp.float32)
    packed_f32 = pack_params(params, jnp.float32)
    out = jax.block_until_ready(generator_forward(z, packed_f32))
    ref = reference_forward(z, packed_f32)
    assert out.shape == (16, IMAGE_SIZE)
    assert jnp.allclose(out, ref, atol=1e-5, rtol=1e-5)

    # 2) Larger batch exercising the batch grid (multiple tiles, weights
    #    resident across grid steps) with bf16 weight storage (f32 accum).
    z_big = jax.random.normal(k_z_big, (512, LATENT_DIM), dtype=jnp.float32)
    packed_bf16 = pack_params(params, jnp.bfloat16)
    out_big = jax.block_until_ready(
        generator_forward(z_big, packed_bf16, block_m=256))
    ref_big = reference_forward(z_big, packed_bf16)
    assert out_big.shape == (512, IMAGE_SIZE)
    # bf16 weight/activation storage -> loosened tolerance vs f32 reference
    assert jnp.allclose(out_big, ref_big, atol=5e-2, rtol=5e-2)

    print("KERNEL_OK")
</pallas_src>

<mosaic_0001>
module attributes {stable_mosaic.version = 11 : i64} {
  func.func @generator_kernel(%arg0: i32, %arg1: memref<16x128xf32, #tpu.memory_space<vmem>>, %arg2: memref<128x256xf32, #tpu.memory_space<vmem>>, %arg3: memref<1x256xf32, #tpu.memory_space<vmem>>, %arg4: memref<256x512xf32, #tpu.memory_space<vmem>>, %arg5: memref<1x512xf32, #tpu.memory_space<vmem>>, %arg6: memref<512x784xf32, #tpu.memory_space<vmem>>, %arg7: memref<1x784xf32, #tpu.memory_space<vmem>>, %arg8: memref<16x784xf32, #tpu.memory_space<vmem>>) attributes {dimension_semantics = [#tpu.dimension_semantics<parallel>], iteration_bounds = array<i64: 1>, scalar_prefetch = 0 : i64, scratch_operands = 0 : i64, tpu.core_type = #tpu.core_type<tc>, window_params = [{transform_indices = @transform_0, window_bounds = array<i64: 16, 128>}, {pipeline_mode = #tpu.pipeline_mode<synchronous>, transform_indices = @transform_1, window_bounds = array<i64: 128, 256>}, {pipeline_mode = #tpu.pipeline_mode<synchronous>, transform_indices = @transform_2, window_bounds = array<i64: 1, 256>}, {pipeline_mode = #tpu.pipeline_mode<synchronous>, transform_indices = @transform_3, window_bounds = array<i64: 256, 512>}, {pipeline_mode = #tpu.pipeline_mode<synchronous>, transform_indices = @transform_4, window_bounds = array<i64: 1, 512>}, {pipeline_mode = #tpu.pipeline_mode<synchronous>, transform_indices = @transform_5, window_bounds = array<i64: 512, 784>}, {pipeline_mode = #tpu.pipeline_mode<synchronous>, transform_indices = @transform_6, window_bounds = array<i64: 1, 784>}, {transform_indices = @transform_7, window_bounds = array<i64: 16, 784>}]} {
    %c0 = arith.constant 0 : index
    %c0_0 = arith.constant 0 : index
    %0 = vector.load %arg1[%c0, %c0_0] : memref<16x128xf32, #tpu.memory_space<vmem>>, vector<16x128xf32>
    %c0_1 = arith.constant 0 : index
    %c0_2 = arith.constant 0 : index
    %1 = vector.load %arg2[%c0_1, %c0_2] : memref<128x256xf32, #tpu.memory_space<vmem>>, vector<128x256xf32>
    %cst = arith.constant dense<0.000000e+00> : vector<16x256xf32>
    %2 = tpu.matmul %0, %1, %cst {dimension_numbers = #tpu.dot_dimension_numbers<[1], [0], [0], [1], [0, 0, 1, 1], [], []>} : vector<16x128xf32>, vector<128x256xf32>, vector<16x256xf32> -> vector<16x256xf32>
    %c0_3 = arith.constant 0 : index
    %c0_4 = arith.constant 0 : index
    %3 = vector.load %arg3[%c0_3, %c0_4] : memref<1x256xf32, #tpu.memory_space<vmem>>, vector<1x256xf32>
    %4 = vector.broadcast %3 : vector<1x256xf32> to vector<16x256xf32>
    %5 = arith.addf %2, %4 : vector<16x256xf32>
    %cst_5 = arith.constant 0.000000e+00 : f32
    %6 = vector.broadcast %cst_5 : f32 to vector<16x256xf32>
    %7 = arith.maximumf %5, %6 : vector<16x256xf32>
    %c0_6 = arith.constant 0 : index
    %c0_7 = arith.constant 0 : index
    %8 = vector.load %arg4[%c0_6, %c0_7] : memref<256x512xf32, #tpu.memory_space<vmem>>, vector<256x512xf32>
    %cst_8 = arith.constant dense<0.000000e+00> : vector<16x512xf32>
    %9 = tpu.matmul %7, %8, %cst_8 {dimension_numbers = #tpu.dot_dimension_numbers<[1], [0], [0], [1], [0, 0, 1, 1], [], []>} : vector<16x256xf32>, vector<256x512xf32>, vector<16x512xf32> -> vector<16x512xf32>
    %c0_9 = arith.constant 0 : index
    %c0_10 = arith.constant 0 : index
    %10 = vector.load %arg5[%c0_9, %c0_10] : memref<1x512xf32, #tpu.memory_space<vmem>>, vector<1x512xf32>
    %11 = vector.broadcast %10 : vector<1x512xf32> to vector<16x512xf32>
    %12 = arith.addf %9, %11 : vector<16x512xf32>
    %cst_11 = arith.constant 0.000000e+00 : f32
    %13 = vector.broadcast %cst_11 : f32 to vector<16x512xf32>
    %14 = arith.maximumf %12, %13 : vector<16x512xf32>
    %c0_12 = arith.constant 0 : index
    %c0_13 = arith.constant 0 : index
    %15 = vector.load %arg6[%c0_12, %c0_13] : memref<512x784xf32, #tpu.memory_space<vmem>>, vector<512x784xf32>
    %cst_14 = arith.constant dense<0.000000e+00> : vector<16x784xf32>
    %16 = tpu.matmul %14, %15, %cst_14 {dimension_numbers = #tpu.dot_dimension_numbers<[1], [0], [0], [1], [0, 0, 1, 1], [], []>} : vector<16x512xf32>, vector<512x784xf32>, vector<16x784xf32> -> vector<16x784xf32>
    %c0_15 = arith.constant 0 : index
    %c0_16 = arith.constant 0 : index
    %17 = vector.load %arg7[%c0_15, %c0_16] : memref<1x784xf32, #tpu.memory_space<vmem>>, vector<1x784xf32>
    %18 = vector.broadcast %17 : vector<1x784xf32> to vector<16x784xf32>
    %19 = arith.addf %16, %18 : vector<16x784xf32>
    %20 = math.tanh %19 : vector<16x784xf32>
    %c0_17 = arith.constant 0 : index
    %c0_18 = arith.constant 0 : index
    %21 = vector.load %arg8[%c0_17, %c0_18] : memref<16x784xf32, #tpu.memory_space<vmem>>, vector<16x784xf32>
    tpu.vector_store %arg8[%c0_17, %c0_18], %20 {strides = array<i32>} : memref<16x784xf32, #tpu.memory_space<vmem>>, vector<16x784xf32>,
    return
  }
  func.func @transform_0(%arg0: i32) -> (i32, i32) {
    %c0_i32 = arith.constant 0 : i32
    %c0_i32_0 = arith.constant 0 : i32
    return %arg0, %c0_i32 : i32, i32
  }
  func.func @transform_1(%arg0: i32) -> (i32, i32) {
    %c0_i32 = arith.constant 0 : i32
    %c0_i32_0 = arith.constant 0 : i32
    %c0_i32_1 = arith.constant 0 : i32
    return %c0_i32, %c0_i32_0 : i32, i32
  }
  func.func @transform_2(%arg0: i32) -> (i32, i32) {
    %c0_i32 = arith.constant 0 : i32
    %c0_i32_0 = arith.constant 0 : i32
    %c0_i32_1 = arith.constant 0 : i32
    return %c0_i32, %c0_i32_0 : i32, i32
  }
  func.func @transform_3(%arg0: i32) -> (i32, i32) {
    %c0_i32 = arith.constant 0 : i32
    %c0_i32_0 = arith.constant 0 : i32
    %c0_i32_1 = arith.constant 0 : i32
    return %c0_i32, %c0_i32_0 : i32, i32
  }
  func.func @transform_4(%arg0: i32) -> (i32, i32) {
    %c0_i32 = arith.constant 0 : i32
    %c0_i32_0 = arith.constant 0 : i32
    %c0_i32_1 = arith.constant 0 : i32
    return %c0_i32, %c0_i32_0 : i32, i32
  }
  func.func @transform_5(%arg0: i32) -> (i32, i32) {
    %c0_i32 = arith.constant 0 : i32
    %c0_i32_0 = arith.constant 0 : i32
    %c0_i32_1 = arith.constant 0 : i32
    return %c0_i32, %c0_i32_0 : i32, i32
  }
  func.func @transform_6(%arg0: i32) -> (i32, i32) {
    %c0_i32 = arith.constant 0 : i32
    %c0_i32_0 = arith.constant 0 : i32
    %c0_i32_1 = arith.constant 0 : i32
    return %c0_i32, %c0_i32_0 : i32, i32
  }
  func.func @transform_7(%arg0: i32) -> (i32, i32) {
    %c0_i32 = arith.constant 0 : i32
    %c0_i32_0 = arith.constant 0 : i32
    return %arg0, %c0_i32 : i32, i32
  }
}

</mosaic_0001>

<bundles_post_ra>
// kernel: tpu_custom_call.1
= control target key start
LH: loop header
LB: loop body
LE: loop exit
PB: predicated region body
PF: predicated region fallthrough
CT: control target
= control target key end

     0   :  { %v2372_v7 = vmov 0.0   ;;  %s4372_s0 = inlined_call_operand.vmem [shape: f32[16,128], index: 0, kind: input, shape index: {}]   ;;  %s4373_s1 = inlined_call_operand.vmem [shape: f32[128,256], index: 1, kind: input, shape index: {}]   ;;  %s4374_s2 = inlined_call_operand.vmem [shape: f32[1,256], index: 2, kind: input, shape index: {}]   ;;  %s4375_s3 = inlined_call_operand.vmem [shape: f32[256,512], index: 3, kind: input, shape index: {}]   ;;  %s4376_s4 = inlined_call_operand.vmem [shape: f32[1,512], index: 4, kind: input, shape index: {}]   ;;  %s4377_s5 = inlined_call_operand.vmem [shape: f32[512,784], index: 5, kind: input, shape index: {}]   ;;  %s4378_s6 = inlined_call_operand.vmem [shape: f32[1,784], index: 6, kind: input, shape index: {}]   ;;  %s4379_s7 = inlined_call_operand.hbm [shape: f32[16,784], index: 7, kind: output, shape index: {}]  }
   0x1   :  { %v30_v0 = vld [vmem:[%s4373_s1 + $0x8] sm:$0xff]  ;;  %v32_v1 = vld [vmem:[%s4373_s1 + $0x18] sm:$0xff]  ;;  %v29_v2 = vld [vmem:[%s4373_s1] sm:$0xff]  ;;  %137 = vmatprep.mubr.f32.mxu0 %v2372_v7 }
   0x2   :  { %v1684_v3 = vpack.c.bf16 %v32_v1, %v30_v0  ;;  %v31_v4 = vld [vmem:[%s4373_s1 + $0x10] sm:$0xff]  ;;  %v34_v5 = vld [vmem:[%s4373_s1 + $0x28] sm:$0xff]  ;;  %v36_v6 = vld [vmem:[%s4373_s1 + $0x38] sm:$0xff] }
   0x3   :  { %v1686_v8 = vpack.c.bf16 %v31_v4, %v29_v2  ;;  %v1688_v9 = vpack.c.bf16 %v36_v6, %v34_v5  ;;  %v33_v10 = vld [vmem:[%s4373_s1 + $0x20] sm:$0xff]  ;;  %v35_v11 = vld [vmem:[%s4373_s1 + $0x30] sm:$0xff]  ;;  %v38_v12 = vld [vmem:[%s4373_s1 + $0x48] sm:$0xff] }
   0x4   :  { %1685 = vmatprep.subr.bf16.mxu0 %v1684_v3  ;;  %v40_v13 = vld [vmem:[%s4373_s1 + $0x58] sm:$0xff]  ;;  %v1690_v14 = vpack.c.bf16 %v35_v11, %v33_v10  ;;  %v37_v16 = vld [vmem:[%s4373_s1 + $0x40] sm:$0xff]  ;;  %v39_v17 = vld [vmem:[%s4373_s1 + $0x50] sm:$0xff] }
   0x5   :  { %1687 = vmatpush1.bf16.msra.mxu0 %v1686_v8  ;;  %v1692_v15 = vpack.c.bf16 %v40_v13, %v38_v12  ;;  %v42_v18 = vld [vmem:[%s4373_s1 + $0x68] sm:$0xff]  ;;  %v44_v19 = vld [vmem:[%s4373_s1 + $0x78] sm:$0xff]  ;;  %v1694_v20 = vpack.c.bf16 %v39_v17, %v37_v16  ;;  %v41_v22 = vld [vmem:[%s4373_s1 + $0x60] sm:$0xff] }
   0x6   :  { %1689 = vmatprep.subr.bf16.mxu0 %v1688_v9  ;;  %v1696_v21 = vpack.c.bf16 %v44_v19, %v42_v18  ;;  %v43_v23 = vld [vmem:[%s4373_s1 + $0x70] sm:$0xff]  ;;  %v46_v24 = vld [vmem:[%s4373_s1 + $0x88] sm:$0xff]  ;;  %v48_v25 = vld [vmem:[%s4373_s1 + $0x98] sm:$0xff] }
   0x7   :  { %v155_v26 = vld [vmem:[%s4375_s3 + $0x8] sm:$0xff]  ;;  %v1698_v28 = vpack.c.bf16 %v43_v23, %v41_v22  ;;  %v45_v29 = vld [vmem:[%s4373_s1 + $0x80] sm:$0xff]  ;;  %v1700_v32 = vpack.c.bf16 %v48_v25, %v46_v24  ;;  %v47_v33 = vld [vmem:[%s4373_s1 + $0x90] sm:$0xff] }
   0x8   :  { %v159_v27 = vld [vmem:[%s4375_s3 + $0x28] sm:$0xff]  ;;  %v154_v31 = vld [vmem:[%s4375_s3] sm:$0xff]  ;;  %v52_v36 = vld [vmem:[%s4373_s1 + $0xb8] sm:$0xff]  ;;  %v1702_v43 = vpack.c.bf16 %v47_v33, %v45_v29 }
   0x9   :  { %1691 = vmatpush1.bf16.msra.mxu0 %v1690_v14  ;;  %v1716_v30 = vpack.c.bf16 %v159_v27, %v155_v26  ;;  %v50_v34 = vld [vmem:[%s4373_s1 + $0xa8] sm:$0xff]  ;;  %v158_v35 = vld [vmem:[%s4375_s3 + $0x20] sm:$0xff]  ;;  %v51_v48 = vld [vmem:[%s4373_s1 + $0xb0] sm:$0xff] }
   0xa   :  { %1693 = vmatprep.subr.bf16.mxu0 %v1692_v15  ;;  %v1718_v37 = vpack.c.bf16 %v158_v35, %v154_v31  ;;  %v163_v38 = vld [vmem:[%s4375_s3 + $0x48] sm:$0xff]  ;;  %v162_v41 = vld [vmem:[%s4375_s3 + $0x40] sm:$0xff]  ;;  %v1704_v47 = vpack.c.bf16 %v52_v36, %v50_v34  ;;  %v56_v51 = vld [vmem:[%s4373_s1 + $0xd8] sm:$0xff] }
   0xb   :  { %1717 = vmatprep.subr.bf16.mxu1 %v1716_v30  ;;  %v167_v39 = vld [vmem:[%s4375_s3 + $0x68] sm:$0xff]  ;;  %v166_v42 = vld [vmem:[%s4375_s3 + $0x60] sm:$0xff]  ;;  %v55_v59 = vld [vmem:[%s4373_s1 + $0xd0] sm:$0xff] }
   0xc   :  { %v1720_v40 = vpack.c.bf16 %v167_v39, %v163_v38  ;;  %v49_v44 = vld [vmem:[%s4373_s1 + $0xa0] sm:$0xff]  ;;  %1719 = vmatpush1.bf16.msra.mxu1 %v1718_v37  ;;  %v1722_v45 = vpack.c.bf16 %v166_v42, %v162_v41  ;;  %v171_v46 = vld [vmem:[%s4375_s3 + $0x88] sm:$0xff]  ;;  %v60_v2 = vld [vmem:[%s4373_s1 + $0xf8] sm:$0xff] }
   0xd   :  { %1695 = vmatpush1.bf16.msra.mxu0 %v1694_v20  ;;  %v54_v49 = vld [vmem:[%s4373_s1 + $0xc8] sm:$0xff]  ;;  %v170_v53 = vld [vmem:[%s4375_s3 + $0x80] sm:$0xff]  ;;  %v1706_v57 = vpack.c.bf16 %v51_v48, %v49_v44  ;;  %v59_v8 = vld [vmem:[%s4373_s1 + $0xf0] sm:$0xff] }
   0xe   :  { %1697 = vmatprep.subr.bf16.mxu0 %v1696_v21  ;;  %1721 = vmatprep.subr.bf16.mxu1 %v1720_v40  ;;  %v175_v50 = vld [vmem:[%s4375_s3 + $0xa8] sm:$0xff]  ;;  %v174_v54 = vld [vmem:[%s4375_s3 + $0xa0] sm:$0xff]  ;;  %v1708_v61 = vpack.c.bf16 %v56_v51, %v54_v49  ;;  %v157_v11 = vld [vmem:[%s4375_s3 + $0x18] sm:$0xff] }
   0xf   :  { %v1724_v52 = vpack.c.bf16 %v175_v50, %v171_v46  ;;  %v179_v55 = vld [vmem:[%s4375_s3 + $0xc8] sm:$0xff]  ;;  %v53_v58 = vld [vmem:[%s4373_s1 + $0xc0] sm:$0xff]  ;;  %v1726_v60 = vpack.c.bf16 %v174_v54, %v170_v53  ;;  %v161_v15 = vld [vmem:[%s4375_s3 + $0x38] sm:$0xff] }
  0x10   :  { %v183_v56 = vld [vmem:[%s4375_s3 + $0xe8] sm:$0xff]  ;;  %1723 = vmatpush1.bf16.msra.mxu1 %v1722_v45  ;;  %v178_v0 = vld [vmem:[%s4375_s3 + $0xc0] sm:$0xff]  ;;  %v1710_v5 = vpack.c.bf16 %v55_v59, %v53_v58  ;;  %v1780_v20 = vpack.c.bf16 %v161_v15, %v157_v11  ;;  %v156_v21 = vld [vmem:[%s4375_s3 + $0x10] sm:$0xff] }
  0x11   :  { %1699 = vmatpush1.bf16.msra.mxu0 %v1698_v28  ;;  %v58_v62 = vld [vmem:[%s4373_s1 + $0xe8] sm:$0xff]  ;;  %1725 = vmatprep.subr.bf16.mxu1 %v1724_v52  ;;  %v1728_v63 = vpack.c.bf16 %v183_v56, %v179_v55  ;;  %v182_v1 = vld [vmem:[%s4375_s3 + $0xe0] sm:$0xff]  ;;  %v160_v22 = vld [vmem:[%s4375_s3 + $0x30] sm:$0xff] }
  0x12   :  { %1701 = vmatprep.subr.bf16.mxu0 %v1700_v32  ;;  %v187_v3 = vld [vmem:[%s4375_s3 + $0x108] sm:$0xff]  ;;  %v57_v6 = vld [vmem:[%s4373_s1 + $0xe0] sm:$0xff]  ;;  %v1730_v9 = vpack.c.bf16 %v182_v1, %v178_v0  ;;  %v1712_v10 = vpack.c.bf16 %v60_v2, %v58_v62  ;;  %v165_v23 = vld [vmem:[%s4375_s3 + $0x58] sm:$0xff]  ;;  %v1782_v31 = vpack.c.bf16 %v160_v22, %v156_v21 }
  0x13   :  { %v191_v4 = vld [vmem:[%s4375_s3 + $0x128] sm:$0xff]  ;;  %v186_v13 = vld [vmem:[%s4375_s3 + $0x100] sm:$0xff]  ;;  %v1714_v18 = vpack.c.bf16 %v59_v8, %v57_v6  ;;  %v169_v25 = vld [vmem:[%s4375_s3 + $0x78] sm:$0xff] }
  0x14   :  { %1727 = vmatpush1.bf16.msra.mxu1 %v1726_v60  ;;  %v1732_v12 = vpack.c.bf16 %v191_v4, %v187_v3  ;;  %v190_v14 = vld [vmem:[%s4375_s3 + $0x120] sm:$0xff]  ;;  %v195_v16 = vld [vmem:[%s4375_s3 + $0x148] sm:$0xff]  ;;  %v1784_v32 = vpack.c.bf16 %v169_v25, %v165_v23  ;;  %v164_v33 = vld [vmem:[%s4375_s3 + $0x50] sm:$0xff] }
  0x15   :  { %1703 = vmatpush1.bf16.msra.mxu0 %v1702_v43  ;;  %1729 = vmatprep.subr.bf16.mxu1 %v1728_v63  ;;  %v199_v17 = vld [vmem:[%s4375_s3 + $0x168] sm:$0xff]  ;;  %v1734_v19 = vpack.c.bf16 %v190_v14, %v186_v13  ;;  %v194_v26 = vld [vmem:[%s4375_s3 + $0x140] sm:$0xff]  ;;  %v168_v34 = vld [vmem:[%s4375_s3 + $0x70] sm:$0xff] }
  0x16   :  { %1705 = vmatprep.subr.bf16.mxu0 %v1704_v47  ;;  %v1736_v24 = vpack.c.bf16 %v199_v17, %v195_v16  ;;  %v198_v27 = vld [vmem:[%s4375_s3 + $0x160] sm:$0xff]  ;;  %v203_v28 = vld [vmem:[%s4375_s3 + $0x188] sm:$0xff]  ;;  %v173_v35 = vld [vmem:[%s4375_s3 + $0x98] sm:$0xff]  ;;  %v1786_v44 = vpack.c.bf16 %v168_v34, %v164_v33 }
  0x17   :  { %v207_v29 = vld [vmem:[%s4375_s3 + $0x1a8] sm:$0xff]  ;;  %v27_v30 = vld [vmem:[%s4372_s0] sm:$0xff]  ;;  %v1738_v36 = vpack.c.bf16 %v198_v27, %v194_v26  ;;  %v177_v37 = vld [vmem:[%s4375_s3 + $0xb8] sm:$0xff] }
  0x18   :  { %1731 = vmatpush1.bf16.msra.mxu1 %v1730_v9  ;;  %v1740_v38 = vpack.c.bf16 %v207_v29, %v203_v28  ;;  %v202_v39 = vld [vmem:[%s4375_s3 + $0x180] sm:$0xff]  ;;  %v211_v41 = vld [vmem:[%s4375_s3 + $0x1c8] sm:$0xff]  ;;  %v1788_v45 = vpack.c.bf16 %v177_v37, %v173_v35  ;;  %v172_v46 = vld [vmem:[%s4375_s3 + $0x90] sm:$0xff] }
  0x19   :  { %1707 = vmatpush1.bf16.msra.mxu0 %v1706_v57  ;;  %1733 = vmatprep.subr.bf16.mxu1 %v1732_v12  ;;  %v206_v40 = vld [vmem:[%s4375_s3 + $0x1a0] sm:$0xff]  ;;  %v215_v42 = vld [vmem:[%s4375_s3 + $0x1e8] sm:$0xff]  ;;  %v176_v47 = vld [vmem:[%s4375_s3 + $0xb0] sm:$0xff] }
  0x1a   :  { %1709 = vmatprep.subr.bf16.mxu0 %v1708_v61  ;;  %v28_v43 = vld [vmem:[%s4372_s0 + $0x8] sm:$0xff]  ;;  %v1742_v48 = vpack.c.bf16 %v206_v40, %v202_v39  ;;  %v185_v49 = vld [vmem:[%s4375_s3 + $0xf8] sm:$0xff]  ;;  %v1744_v50 = vpack.c.bf16 %v215_v42, %v211_v41  ;;  %v210_v51 = vld [vmem:[%s4375_s3 + $0x1c0] sm:$0xff]  ;;  %v1790_v55 = vpack.c.bf16 %v176_v47, %v172_v46 }
  0x1b   :  { %v214_v52 = vld [vmem:[%s4375_s3 + $0x1e0] sm:$0xff]  ;;  %v219_v53 = vld [vmem:[%s4375_s3 + $0x208] sm:$0xff]  ;;  %v180_v57 = vld [vmem:[%s4375_s3 + $0xd0] sm:$0xff] }
  0x1c   :  { %1735 = vmatpush1.bf16.msra.mxu1 %v1734_v19  ;;  %v223_v54 = vld [vmem:[%s4375_s3 + $0x228] sm:$0xff]  ;;  %v184_v58 = vld [vmem:[%s4375_s3 + $0xf0] sm:$0xff]  ;;  %v189_v59 = vld [vmem:[%s4375_s3 + $0x118] sm:$0xff]  ;;  %v1746_v60 = vpack.c.bf16 %v214_v52, %v210_v51 }
  0x1d   :  { %1711 = vmatpush1.bf16.msra.mxu0 %v1710_v5  ;;  %1737 = vmatprep.subr.bf16.mxu1 %v1736_v24  ;;  %v193_v61 = vld [vmem:[%s4375_s3 + $0x138] sm:$0xff]  ;;  %v1748_v62 = vpack.c.bf16 %v223_v54, %v219_v53  ;;  %v218_v63 = vld [vmem:[%s4375_s3 + $0x200] sm:$0xff]  ;;  %v227_v1 = vld [vmem:[%s4375_s3 + $0x248] sm:$0xff]  ;;  %v1794_v3 = vpack.c.bf16 %v184_v58, %v180_v57 }
  0x1e   :  { %1713 = vmatprep.subr.bf16.mxu0 %v1712_v10  ;;  %v222_v0 = vld [vmem:[%s4375_s3 + $0x220] sm:$0xff]  ;;  %v231_v2 = vld [vmem:[%s4375_s3 + $0x268] sm:$0xff]  ;;  %v1796_v4 = vpack.c.bf16 %v193_v61, %v189_v59  ;;  %v188_v5 = vld [vmem:[%s4375_s3 + $0x110] sm:$0xff] }
  0x1f   :  { %v192_v6 = vld [vmem:[%s4375_s3 + $0x130] sm:$0xff]  ;;  %v197_v8 = vld [vmem:[%s4375_s3 + $0x158] sm:$0xff]  ;;  %v1750_v9 = vpack.c.bf16 %v222_v0, %v218_v63  ;;  %v1752_v11 = vpack.c.bf16 %v231_v2, %v227_v1  ;;  %v226_v12 = vld [vmem:[%s4375_s3 + $0x240] sm:$0xff] }
  0x20   :  { %1739 = vmatpush1.bf16.msra.mxu1 %v1738_v36  ;;  %v201_v10 = vld [vmem:[%s4375_s3 + $0x178] sm:$0xff]  ;;  %v230_v13 = vld [vmem:[%s4375_s3 + $0x260] sm:$0xff]  ;;  %v235_v14 = vld [vmem:[%s4375_s3 + $0x288] sm:$0xff]  ;;  %v1798_v16 = vpack.c.bf16 %v192_v6, %v188_v5 }
  0x21   :  { %1715 = vmatpush1.bf16.msra.mxu0 %v1714_v18  ;;  %1741 = vmatprep.subr.bf16.mxu1 %v1740_v38  ;;  %v239_v15 = vld [vmem:[%s4375_s3 + $0x2a8] sm:$0xff]  ;;  %v196_v17 = vld [vmem:[%s4375_s3 + $0x150] sm:$0xff]  ;;  %v1800_v18 = vpack.c.bf16 %v201_v10, %v197_v8  ;;  %v209_v21 = vld [vmem:[%s4375_s3 + $0x1b8] sm:$0xff]  ;;  %v1754_v22 = vpack.c.bf16 %v230_v13, %v226_v12 }
  0x22   :  { %1781 = vmatprep.subr.bf16.mxu0 %v1780_v20  ;;  %v200_v19 = vld [vmem:[%s4375_s3 + $0x170] sm:$0xff]  ;;  %v205_v20 = vld [vmem:[%s4375_s3 + $0x198] sm:$0xff]  ;;  %v1756_v23 = vpack.c.bf16 %v239_v15, %v235_v14  ;;  %v234_v24 = vld [vmem:[%s4375_s3 + $0x280] sm:$0xff] }
  0x23   :  { %v238_v25 = vld [vmem:[%s4375_s3 + $0x2a0] sm:$0xff] }
  0x24   :  { %138 = vmatmul.mubr.f32.vlgmr.msra.gmra.mrb[0].mxu0 %v27_v30  ;;  %1743 = vmatpush1.bf16.msra.mxu1 %v1742_v48 }
  0x25   :  { %143 = vmatprep.mubr.f32.mxu0 %v2372_v7  ;;  %1783 = vmatpush1.bf16.msra.mxu0 %v1782_v31  ;;  %v181_v7 = vld [vmem:[%s4375_s3 + $0xd8] sm:$0xff] }
  0x26   :  { %1785 = vmatprep.subr.bf16.mxu0 %v1784_v32  ;;  %v1792_v56 = vpack.c.bf16 %v185_v49, %v181_v7  ;;  %1745 = vmatprep.subr.bf16.mxu1 %v1744_v50 }
  0x28   :  { %144 = vmatmul.mubr.f32.gmra.mrb[2].mxu0 %v28_v43  ;;  %1747 = vmatpush1.bf16.msra.mxu1 %v1746_v60 }
  0x29   :  { %1787 = vmatpush1.bf16.msra.mxu0 %v1786_v44  ;;  %1749 = vmatprep.subr.bf16.mxu1 %v1748_v62 }
  0x2a   :  { %1789 = vmatprep.subr.bf16.mxu0 %v1788_v45 }
  0x2c   :  { %1751 = vmatpush1.bf16.msra.mxu1 %v1750_v9 }
  0x2d   :  { %1791 = vmatpush1.bf16.msra.mxu0 %v1790_v55  ;;  %1753 = vmatprep.subr.bf16.mxu1 %v1752_v11 }
  0x2e   :  { %1793 = vmatprep.subr.bf16.mxu0 %v1792_v56 }
  0x31   :  { %1795 = vmatpush1.bf16.msra.mxu0 %v1794_v3 }
  0x32   :  { %1797 = vmatprep.subr.bf16.mxu0 %v1796_v4 }
  0x33   :  { %12 = vsyncpa [#allocation3], 0  ;;  %v243_v26 = vld [vmem:[%s4375_s3 + $0x2c8] sm:$0xff]  ;;  %v1802_v28 = vpack.c.bf16 %v200_v19, %v196_v17  ;;  %v1804_v29 = vpack.c.bf16 %v209_v21, %v205_v20  ;;  %v204_v30 = vld [vmem:[%s4375_s3 + $0x190] sm:$0xff]  ;;  %1755 = vmatpush1.bf16.msra.mxu1 %v1754_v22  ;;  %v1758_v33 = vpack.c.bf16 %v238_v25, %v234_v24  ;;  %vm1583_vm0 = vcmask 130048  }
  0x34   :  { %v247_v27 = vld [vmem:[%s4375_s3 + $0x2e8] sm:$0xff]  ;;  %v208_v31 = vld [vmem:[%s4375_s3 + $0x1b0] sm:$0xff]  ;;  %v213_v32 = vld [vmem:[%s4375_s3 + $0x1d8] sm:$0xff]  ;;  %1757 = vmatprep.subr.bf16.mxu1 %v1756_v23 }
  0x35   :  { %1799 = vmatpush1.bf16.msra.mxu0 %v1798_v16  ;;  %v217_v34 = vld [vmem:[%s4375_s3 + $0x1f8] sm:$0xff]  ;;  %v1760_v35 = vpack.c.bf16 %v247_v27, %v243_v26  ;;  %v242_v36 = vld [vmem:[%s4375_s3 + $0x2c0] sm:$0xff]  ;;  %v251_v38 = vld [vmem:[%s4375_s3 + $0x308] sm:$0xff]  ;;  %v1806_v40 = vpack.c.bf16 %v208_v31, %v204_v30 }
  0x36   :  { %1801 = vmatprep.subr.bf16.mxu0 %v1800_v18  ;;  %v246_v37 = vld [vmem:[%s4375_s3 + $0x2e0] sm:$0xff]  ;;  %v255_v39 = vld [vmem:[%s4375_s3 + $0x328] sm:$0xff]  ;;  %v1808_v41 = vpack.c.bf16 %v217_v34, %v213_v32  ;;  %v212_v42 = vld [vmem:[%s4375_s3 + $0x1d0] sm:$0xff] }
  0x37   :  { %v216_v43 = vld [vmem:[%s4375_s3 + $0x1f0] sm:$0xff]  ;;  %v221_v44 = vld [vmem:[%s4375_s3 + $0x218] sm:$0xff]  ;;  %1759 = vmatpush1.bf16.msra.mxu1 %v1758_v33  ;;  %v1762_v45 = vpack.c.bf16 %v246_v37, %v242_v36  ;;  %v1764_v47 = vpack.c.bf16 %v255_v39, %v251_v38  ;;  %v250_v7 = vld [vmem:[%s4375_s3 + $0x300] sm:$0xff] }
  0x38   :  { %v225_v46 = vld [vmem:[%s4375_s3 + $0x238] sm:$0xff]  ;;  %1761 = vmatprep.subr.bf16.mxu1 %v1760_v35  ;;  %v254_v48 = vld [vmem:[%s4375_s3 + $0x320] sm:$0xff]  ;;  %v259_v49 = vld [vmem:[%s4375_s3 + $0x348] sm:$0xff]  ;;  %v1810_v51 = vpack.c.bf16 %v216_v43, %v212_v42 }
  0x39   :  { %1803 = vmatpush1.bf16.msra.mxu0 %v1802_v28  ;;  %v263_v50 = vld [vmem:[%s4375_s3 + $0x368] sm:$0xff]  ;;  %v1812_v52 = vpack.c.bf16 %v225_v46, %v221_v44  ;;  %v220_v53 = vld [vmem:[%s4375_s3 + $0x210] sm:$0xff]  ;;  %v229_v55 = vld [vmem:[%s4375_s3 + $0x258] sm:$0xff]  ;;  %v1766_v56 = vpack.c.bf16 %v254_v48, %v250_v7 }
  0x3a   :  { %1805 = vmatprep.subr.bf16.mxu0 %v1804_v29  ;;  %v224_v54 = vld [vmem:[%s4375_s3 + $0x230] sm:$0xff]  ;;  %v233_v57 = vld [vmem:[%s4375_s3 + $0x278] sm:$0xff]  ;;  %v1768_v58 = vpack.c.bf16 %v263_v50, %v259_v49  ;;  %v258_v59 = vld [vmem:[%s4375_s3 + $0x340] sm:$0xff] }
  0x3b   :  { %1763 = vmatpush1.bf16.msra.mxu1 %v1762_v45  ;;  %v262_v60 = vld [vmem:[%s4375_s3 + $0x360] sm:$0xff]  ;;  %v267_v61 = vld [vmem:[%s4375_s3 + $0x388] sm:$0xff]  ;;  %v1814_v63 = vpack.c.bf16 %v224_v54, %v220_v53  ;;  %v1816_v0 = vpack.c.bf16 %v233_v57, %v229_v55  ;;  %v228_v1 = vld [vmem:[%s4375_s3 + $0x250] sm:$0xff]  ;;  %v63_v57 = vlaneseq }
  0x3c   :  { %1765 = vmatprep.subr.bf16.mxu1 %v1764_v47  ;;  %v271_v62 = vld [vmem:[%s4375_s3 + $0x3a8] sm:$0xff]  ;;  %v232_v2 = vld [vmem:[%s4375_s3 + $0x270] sm:$0xff]  ;;  %v1770_v3 = vpack.c.bf16 %v262_v60, %v258_v59  ;;  %v237_v4 = vld [vmem:[%s4375_s3 + $0x298] sm:$0xff] }
  0x3d   :  { %1807 = vmatpush1.bf16.msra.mxu0 %v1806_v40  ;;  %v241_v5 = vld [vmem:[%s4375_s3 + $0x2b8] sm:$0xff]  ;;  %v1772_v6 = vpack.c.bf16 %v271_v62, %v267_v61  ;;  %v1818_v8 = vpack.c.bf16 %v232_v2, %v228_v1  ;;  %v236_v10 = vld [vmem:[%s4375_s3 + $0x290] sm:$0xff]  ;;  %v266_v34 = vld [vmem:[%s4375_s3 + $0x380] sm:$0xff] }
  0x3e   :  { %1809 = vmatprep.subr.bf16.mxu0 %v1808_v41  ;;  %v1820_v9 = vpack.c.bf16 %v241_v5, %v237_v4  ;;  %v240_v11 = vld [vmem:[%s4375_s3 + $0x2b0] sm:$0xff]  ;;  %v245_v12 = vld [vmem:[%s4375_s3 + $0x2d8] sm:$0xff]  ;;  %v270_v35 = vld [vmem:[%s4375_s3 + $0x3a0] sm:$0xff] }
  0x3f   :  { %1767 = vmatpush1.bf16.msra.mxu1 %v1766_v56  ;;  %v249_v13 = vld [vmem:[%s4375_s3 + $0x2f8] sm:$0xff]  ;;  %v1822_v14 = vpack.c.bf16 %v240_v11, %v236_v10  ;;  %v244_v16 = vld [vmem:[%s4375_s3 + $0x2d0] sm:$0xff]  ;;  %v1774_v37 = vpack.c.bf16 %v270_v35, %v266_v34  ;;  %v275_v40 = vld [vmem:[%s4375_s3 + $0x3c8] sm:$0xff] }
  0x40   :  { %1769 = vmatprep.subr.bf16.mxu1 %v1768_v58  ;;  %v1824_v15 = vpack.c.bf16 %v249_v13, %v245_v12  ;;  %v248_v17 = vld [vmem:[%s4375_s3 + $0x2f0] sm:$0xff]  ;;  %v253_v18 = vld [vmem:[%s4375_s3 + $0x318] sm:$0xff]  ;;  %v279_v41 = vld [vmem:[%s4375_s3 + $0x3e8] sm:$0xff]  ;;  %v2916_v58 = vshrl.u32 %v63_v57, 7 }
  0x41   :  { %1811 = vmatpush1.bf16.msra.mxu0 %v1810_v51  ;;  %v257_v19 = vld [vmem:[%s4375_s3 + $0x338] sm:$0xff]  ;;  %v1826_v20 = vpack.c.bf16 %v248_v17, %v244_v16  ;;  %v252_v22 = vld [vmem:[%s4375_s3 + $0x310] sm:$0xff]  ;;  %v1776_v43 = vpack.c.bf16 %v279_v41, %v275_v40  ;;  %v274_v45 = vld [vmem:[%s4375_s3 + $0x3c0] sm:$0xff] }
  0x42   :  { %1813 = vmatprep.subr.bf16.mxu0 %v1812_v52  ;;  %v1828_v21 = vpack.c.bf16 %v257_v19, %v253_v18  ;;  %v256_v23 = vld [vmem:[%s4375_s3 + $0x330] sm:$0xff]  ;;  %v261_v24 = vld [vmem:[%s4375_s3 + $0x358] sm:$0xff]  ;;  %v278_v46 = vld [vmem:[%s4375_s3 + $0x3e0] sm:$0xff]  ;;  %v2919_v59 = vsub.s32 0, %v2916_v58  ;;  %v2925_v61 = vsub.s32 1, %v2916_v58 }
  0x43   :  { %1771 = vmatpush1.bf16.msra.mxu1 %v1770_v3  ;;  %v265_v25 = vld [vmem:[%s4375_s3 + $0x378] sm:$0xff]  ;;  %v1830_v26 = vpack.c.bf16 %v256_v23, %v252_v22  ;;  %v260_v28 = vld [vmem:[%s4375_s3 + $0x350] sm:$0xff]  ;;  %v1778_v7 = vpack.c.bf16 %v278_v46, %v274_v45  ;;  %v467_v51 = vld [vmem:[%s4377_s5 + $0x8] sm:$0xff] }
  0x44   :  { %1773 = vmatprep.subr.bf16.mxu1 %v1772_v6  ;;  %v1832_v27 = vpack.c.bf16 %v265_v25, %v261_v24  ;;  %v264_v29 = vld [vmem:[%s4375_s3 + $0x370] sm:$0xff]  ;;  %v269_v30 = vld [vmem:[%s4375_s3 + $0x398] sm:$0xff]  ;;  %v474_v52 = vld [vmem:[%s4377_s5 + $0x40] sm:$0xff] }
  0x45   :  { %1815 = vmatpush1.bf16.msra.mxu0 %v1814_v63  ;;  %v273_v31 = vld [vmem:[%s4375_s3 + $0x3b8] sm:$0xff]  ;;  %v1834_v32 = vpack.c.bf16 %v264_v29, %v260_v28  ;;  %v268_v36 = vld [vmem:[%s4375_s3 + $0x390] sm:$0xff]  ;;  %v1844_v54 = vpack.c.bf16 %v474_v52, %v467_v51  ;;  %v61_v60 = vld [vmem:[%s4374_s2] sm:$0x3] }
  0x46   :  { %1817 = vmatprep.subr.bf16.mxu0 %v1816_v0  ;;  %v1836_v33 = vpack.c.bf16 %v273_v31, %v269_v30  ;;  %v272_v38 = vld [vmem:[%s4375_s3 + $0x3b0] sm:$0xff]  ;;  %v277_v42 = vld [vmem:[%s4375_s3 + $0x3d8] sm:$0xff]  ;;  %v66_v62 = vrot.slane %v61_v60, %v2919_v59  ;;  %v70_v63 = vrot.slane %v61_v60, %v2925_v61  ;;  %v466_v1 = vld [vmem:[%s4377_s5] sm:$0xff] }
  0x47   :  { %v1838_v39 = vpack.c.bf16 %v272_v38, %v268_v36  ;;  %1775 = vmatpush1.bf16.msra.mxu1 %v1774_v37  ;;  %v281_v44 = vld [vmem:[%s4375_s3 + $0x3f8] sm:$0xff]  ;;  %v276_v48 = vld [vmem:[%s4375_s3 + $0x3d0] sm:$0xff]  ;;  %v475_v6 = vld [vmem:[%s4377_s5 + $0x48] sm:$0xff] }
  0x48   :  { %v1840_v47 = vpack.c.bf16 %v281_v44, %v277_v42  ;;  %v280_v49 = vld [vmem:[%s4375_s3 + $0x3f0] sm:$0xff]  ;;  %1777 = vmatprep.subr.bf16.mxu1 %v1776_v43  ;;  %v469_v53 = vld [vmem:[%s4377_s5 + $0x18] sm:$0xff]  ;;  %v483_v11 = vld [vmem:[%s4377_s5 + $0x88] sm:$0xff] }
  0x49   :  { %1819 = vmatpush1.bf16.msra.mxu0 %v1818_v8  ;;  %v1842_v50 = vpack.c.bf16 %v280_v49, %v276_v48  ;;  %v476_v55 = vld [vmem:[%s4377_s5 + $0x50] sm:$0xff]  ;;  %v473_v2 = vld [vmem:[%s4377_s5 + $0x38] sm:$0xff]  ;;  %v490_v12 = vld [vmem:[%s4377_s5 + $0xc0] sm:$0xff] }
  0x4a   :  { %1821 = vmatprep.subr.bf16.mxu0 %v1820_v9  ;;  %v1972_v56 = vpack.c.bf16 %v476_v55, %v469_v53  ;;  %v468_v5 = vld [vmem:[%s4377_s5 + $0x10] sm:$0xff]  ;;  %v481_v8 = vld [vmem:[%s4377_s5 + $0x78] sm:$0xff]  ;;  %v487_v18 = vld [vmem:[%s4377_s5 + $0xa8] sm:$0xff]  ;;  %v1976_v23 = vpack.c.bf16 %v490_v12, %v483_v11 }
  0x4b   :  { %1779 = vmatpush1.bf16.msra.mxu1 %v1778_v7  ;;  %v488_v10 = vld [vmem:[%s4377_s5 + $0xb0] sm:$0xff]  ;;  %v1974_v16 = vpack.c.bf16 %v475_v6, %v468_v5  ;;  %v482_v24 = vld [vmem:[%s4377_s5 + $0x80] sm:$0xff]  ;;  %v489_v25 = vld [vmem:[%s4377_s5 + $0xb8] sm:$0xff] }
  0x4c   :  { %1845 = vmatprep.subr.bf16.mxu1 %v1844_v54  ;;  %v480_v17 = vld [vmem:[%s4377_s5 + $0x70] sm:$0xff]  ;;  %v1848_v22 = vpack.c.bf16 %v488_v10, %v481_v8  ;;  %v502_v28 = vld [vmem:[%s4377_s5 + $0x120] sm:$0xff]  ;;  %v497_v29 = vld [vmem:[%s4377_s5 + $0xf8] sm:$0xff]  ;;  %v1978_v34 = vpack.c.bf16 %v489_v25, %v482_v24 }
  0x4d   :  { %1823 = vmatpush1.bf16.msra.mxu0 %v1822_v14  ;;  %v504_v30 = vld [vmem:[%s4377_s5 + $0x130] sm:$0xff]  ;;  %v494_v35 = vld [vmem:[%s4377_s5 + $0xe0] sm:$0xff]  ;;  %v501_v36 = vld [vmem:[%s4377_s5 + $0x118] sm:$0xff] }
  0x4e   :  { %1825 = vmatprep.subr.bf16.mxu0 %v1824_v15  ;;  %v1846_v15 = vpack.c.bf16 %v473_v2, %v466_v1  ;;  %v1980_v38 = vpack.c.bf16 %v504_v30, %v497_v29  ;;  %v503_v40 = vld [vmem:[%s4377_s5 + $0x128] sm:$0xff]  ;;  %v509_v41 = vld [vmem:[%s4377_s5 + $0x158] sm:$0xff]  ;;  %v516_v42 = vld [vmem:[%s4377_s5 + $0x190] sm:$0xff]  ;;  %v1854_v45 = vpack.c.bf16 %v501_v36, %v494_v35 }
  0x4f   :  { %v511_v43 = vld [vmem:[%s4377_s5 + $0x168] sm:$0xff]  ;;  %v518_v44 = vld [vmem:[%s4377_s5 + $0x1a0] sm:$0xff]  ;;  %v1856_v48 = vpack.c.bf16 %v516_v42, %v509_v41  ;;  %v517_v51 = vld [vmem:[%s4377_s5 + $0x198] sm:$0xff] }
  0x50   :  { %v515_v7 = vld [vmem:[%s4377_s5 + $0x188] sm:$0xff]  ;;  %v1984_v49 = vpack.c.bf16 %v518_v44, %v511_v43  ;;  %v530_v53 = vld [vmem:[%s4377_s5 + $0x200] sm:$0xff]  ;;  %v525_v54 = vld [vmem:[%s4377_s5 + $0x1d8] sm:$0xff] }
  0x51   :  { %1827 = vmatpush1.bf16.msra.mxu0 %v1826_v20  ;;  %v523_v52 = vld [vmem:[%s4377_s5 + $0x1c8] sm:$0xff]  ;;  %v532_v55 = vld [vmem:[%s4377_s5 + $0x210] sm:$0xff]  ;;  %v522_v60 = vld [vmem:[%s4377_s5 + $0x1c0] sm:$0xff] }
  0x52   :  { %1829 = vmatprep.subr.bf16.mxu0 %v1828_v21  ;;  %v524_v1 = vld [vmem:[%s4377_s5 + $0x1d0] sm:$0xff]  ;;  %v531_v2 = vld [vmem:[%s4377_s5 + $0x208] sm:$0xff]  ;;  %v546_v6 = vld [vmem:[%s4377_s5 + $0x280] sm:$0xff] }
  0x53   :  { %v539_v5 = vld [vmem:[%s4377_s5 + $0x248] sm:$0xff]  ;;  %v536_v10 = vld [vmem:[%s4377_s5 + $0x230] sm:$0xff]  ;;  %v586_v41 = vld [vmem:[%s4377_s5 + $0x3c0] sm:$0xff] }
  0x54   :  { %v543_v11 = vld [vmem:[%s4377_s5 + $0x268] sm:$0xff]  ;;  %v572_v29 = vld [vmem:[%s4377_s5 + $0x350] sm:$0xff]  ;;  %v581_v42 = vld [vmem:[%s4377_s5 + $0x398] sm:$0xff] }
  0x55   :  { %1831 = vmatpush1.bf16.msra.mxu0 %v1830_v26  ;;  %v495_v26 = vld [vmem:[%s4377_s5 + $0xe8] sm:$0xff]  ;;  %v588_v43 = vld [vmem:[%s4377_s5 + $0x3d0] sm:$0xff] }
  0x56   :  { %1833 = vmatprep.subr.bf16.mxu0 %v1832_v27  ;;  %v1852_v37 = vpack.c.bf16 %v502_v28, %v495_v26  ;;  %v552_v26 = vld [vmem:[%s4377_s5 + $0x2b0] sm:$0xff]  ;;  %v565_v28 = vld [vmem:[%s4377_s5 + $0x318] sm:$0xff]  ;;  %v567_v30 = vld [vmem:[%s4377_s5 + $0x328] sm:$0xff] }
  0x57   :  { %v571_v35 = vld [vmem:[%s4377_s5 + $0x348] sm:$0xff]  ;;  %v1872_v36 = vpack.c.bf16 %v572_v29, %v565_v28  ;;  %v642_v28 = vld [vmem:[%s4377_s5 + $0x580] sm:$0xff]  ;;  %v637_v29 = vld [vmem:[%s4377_s5 + $0x558] sm:$0xff] }
  0x59   :  { %1835 = vmatpush1.bf16.msra.mxu0 %v1834_v32 }
  0x5a   :  { %1837 = vmatprep.subr.bf16.mxu0 %v1836_v33  ;;  %v1850_v33 = vpack.c.bf16 %v487_v18, %v480_v17  ;;  %v558_v17 = vld [vmem:[%s4377_s5 + $0x2e0] sm:$0xff]  ;;  %v553_v18 = vld [vmem:[%s4377_s5 + $0x2b8] sm:$0xff] }
  0x5d   :  { %1839 = vmatpush1.bf16.msra.mxu0 %v1838_v39  ;;  %v496_v39 = vld [vmem:[%s4377_s5 + $0xf0] sm:$0xff] }
  0x5e   :  { %1841 = vmatprep.subr.bf16.mxu0 %v1840_v47  ;;  %v1982_v46 = vpack.c.bf16 %v503_v40, %v496_v39  ;;  %v508_v47 = vld [vmem:[%s4377_s5 + $0x150] sm:$0xff]  ;;  %v573_v39 = vld [vmem:[%s4377_s5 + $0x358] sm:$0xff]  ;;  %v579_v40 = vld [vmem:[%s4377_s5 + $0x388] sm:$0xff] }
  0x61   :  { %1843 = vmatpush1.bf16.msra.mxu0 %v1842_v50  ;;  %v510_v50 = vld [vmem:[%s4377_s5 + $0x160] sm:$0xff] }
  0x62   :  { %1973 = vmatprep.subr.bf16.mxu0 %v1972_v56  ;;  %v1858_v56 = vpack.c.bf16 %v515_v7, %v508_v47  ;;  %v1986_v57 = vpack.c.bf16 %v517_v51, %v510_v50  ;;  %v585_v47 = vld [vmem:[%s4377_s5 + $0x3b8] sm:$0xff]  ;;  %v1876_v7 = vpack.c.bf16 %v586_v41, %v579_v40  ;;  %v587_v50 = vld [vmem:[%s4377_s5 + $0x3c8] sm:$0xff]  ;;  %v656_v40 = vld [vmem:[%s4377_s5 + $0x5f0] sm:$0xff] }
  0x63   :  { %v593_v51 = vld [vmem:[%s4377_s5 + $0x3f8] sm:$0xff]  ;;  %v651_v41 = vld [vmem:[%s4377_s5 + $0x5c8] sm:$0xff] }
  0xf7   :  { %v139_v0 = vpop.f32.mrb[0].mxu0 }
  0xf8   :  { %v140_v3 = vadd.f32 %v139_v0, %v66_v62  ;;  %v141_v4 = vpop.f32.mrb[1].mxu0  ;;  %v1988_v0 = vpack.c.bf16 %v532_v55, %v525_v54  ;;  %v602_v54 = vld [vmem:[%s4377_s5 + $0x440] sm:$0xff] }
  0xf9   :  { %v142_v9 = vadd.f32 %v141_v4, %v70_v63  ;;  %v544_v4 = vld [vmem:[%s4377_s5 + $0x270] sm:$0xff] }
  0xfa   :  { %v150_v19 = vmax.f32 %v140_v3, 0.0  ;;  %v537_v3 = vld [vmem:[%s4377_s5 + $0x238] sm:$0xff] }
  0xfb   :  { %v151_v13 = vmax.f32 %v142_v9, 0.0  ;;  %v145_v14 = vpop.f32.mrb[2].mxu0  ;;  %v1990_v9 = vpack.c.bf16 %v531_v2, %v524_v1  ;;  %v1864_v12 = vpack.c.bf16 %v544_v4, %v537_v3  ;;  %v601_v1 = vld [vmem:[%s4377_s5 + $0x438] sm:$0xff]  ;;  %v607_v2 = vld [vmem:[%s4377_s5 + $0x468] sm:$0xff]  ;;  %v614_v3 = vld [vmem:[%s4377_s5 + $0x4a0] sm:$0xff] }
  0xfc   :  { %v146_v20 = vadd.f32 %v145_v14, %v66_v62  ;;  %v147_v21 = vpop.f32.mrb[3].mxu0  ;;  %v529_v62 = vld [vmem:[%s4377_s5 + $0x1f8] sm:$0xff]  ;;  %v538_v14 = vld [vmem:[%s4377_s5 + $0x240] sm:$0xff] }
  0xfd   :  { %v148_v27 = vadd.f32 %v147_v21, %v70_v63  ;;  %368 = vmatprep.mubr.f32.mxu1 %v151_v13  ;;  %445 = vmatprep.mubr.f32.mxu0 %v151_v13  ;;  %v1860_v63 = vpack.c.bf16 %v530_v53, %v523_v52  ;;  %v1862_v8 = vpack.c.bf16 %v529_v62, %v522_v60  ;;  %v600_v52 = vld [vmem:[%s4377_s5 + $0x430] sm:$0xff]  ;;  %v595_v53 = vld [vmem:[%s4377_s5 + $0x408] sm:$0xff]  ;;  %v609_v4 = vld [vmem:[%s4377_s5 + $0x478] sm:$0xff] }
  0xfe   :  { %v152_v31 = vmax.f32 %v146_v20, 0.0  ;;  %369 = vmatmul.mubr.f32.vlgmr.msra.gmra.mrb[0].mxu1 %v150_v19  ;;  %446 = vmatmul.mubr.f32.vlgmr.msra.gmra.mrb[4].mxu0 %v150_v19  ;;  %v1992_v13 = vpack.c.bf16 %v546_v6, %v539_v5  ;;  %v560_v19 = vld [vmem:[%s4377_s5 + $0x2f0] sm:$0xff]  ;;  %v1866_v20 = vpack.c.bf16 %v543_v11, %v536_v10  ;;  %v599_v60 = vld [vmem:[%s4377_s5 + $0x428] sm:$0xff]  ;;  %v1880_v62 = vpack.c.bf16 %v600_v52, %v593_v51  ;;  %v613_v10 = vld [vmem:[%s4377_s5 + $0x498] sm:$0xff] }
  0xff   :  { %v153_v32 = vmax.f32 %v148_v27, 0.0  ;;  %1847 = vmatpush1.bf16.msra.mxu1 %v1846_v15  ;;  %1975 = vmatpush1.bf16.msra.mxu0 %v1974_v16  ;;  %v545_v15 = vld [vmem:[%s4377_s5 + $0x278] sm:$0xff]  ;;  %v551_v16 = vld [vmem:[%s4377_s5 + $0x2a8] sm:$0xff]  ;;  %v1996_v25 = vpack.c.bf16 %v560_v19, %v553_v18  ;;  %v616_v5 = vld [vmem:[%s4377_s5 + $0x4b0] sm:$0xff]  ;;  %v1884_v11 = vpack.c.bf16 %v614_v3, %v607_v2 }
 0x100   :  { %1849 = vmatprep.subr.bf16.mxu1 %v1848_v22  ;;  %1977 = vmatprep.subr.bf16.mxu0 %v1976_v23  ;;  %v1994_v21 = vpack.c.bf16 %v545_v15, %v538_v14  ;;  %v550_v22 = vld [vmem:[%s4377_s5 + $0x2a0] sm:$0xff]  ;;  %v557_v23 = vld [vmem:[%s4377_s5 + $0x2d8] sm:$0xff]  ;;  %v1868_v24 = vpack.c.bf16 %v558_v17, %v551_v16  ;;  %v559_v27 = vld [vmem:[%s4377_s5 + $0x2e8] sm:$0xff] }
 0x101   :  { %374 = vmatprep.mubr.f32.mxu1 %v153_v32  ;;  %451 = vmatprep.mubr.f32.mxu0 %v153_v32  ;;  %v1870_v32 = vpack.c.bf16 %v557_v23, %v550_v22  ;;  %v615_v14 = vld [vmem:[%s4377_s5 + $0x4a8] sm:$0xff]  ;;  %v621_v15 = vld [vmem:[%s4377_s5 + $0x4d8] sm:$0xff]  ;;  %v628_v16 = vld [vmem:[%s4377_s5 + $0x510] sm:$0xff] }
 0x102   :  { %375 = vmatmul.mubr.f32.gmra.mrb[2].mxu1 %v152_v31  ;;  %452 = vmatmul.mubr.f32.gmra.mrb[6].mxu0 %v152_v31  ;;  %v574_v31 = vld [vmem:[%s4377_s5 + $0x360] sm:$0xff]  ;;  %v623_v17 = vld [vmem:[%s4377_s5 + $0x4e8] sm:$0xff]  ;;  %v1888_v23 = vpack.c.bf16 %v628_v16, %v621_v15  ;;  %v665_v52 = vld [vmem:[%s4377_s5 + $0x638] sm:$0xff] }
 0x103   :  { %1851 = vmatpush1.bf16.msra.mxu1 %v1850_v33  ;;  %1979 = vmatpush1.bf16.msra.mxu0 %v1978_v34  ;;  %v1998_v33 = vpack.c.bf16 %v559_v27, %v552_v26  ;;  %v564_v34 = vld [vmem:[%s4377_s5 + $0x310] sm:$0xff]  ;;  %v630_v18 = vld [vmem:[%s4377_s5 + $0x520] sm:$0xff]  ;;  %v627_v22 = vld [vmem:[%s4377_s5 + $0x508] sm:$0xff] }
 0x104   :  { %1853 = vmatprep.subr.bf16.mxu1 %v1852_v37  ;;  %1981 = vmatprep.subr.bf16.mxu0 %v1980_v38  ;;  %v2000_v37 = vpack.c.bf16 %v574_v31, %v567_v30  ;;  %v566_v38 = vld [vmem:[%s4377_s5 + $0x320] sm:$0xff]  ;;  %v1874_v44 = vpack.c.bf16 %v571_v35, %v564_v34  ;;  %v629_v26 = vld [vmem:[%s4377_s5 + $0x518] sm:$0xff]  ;;  %v635_v27 = vld [vmem:[%s4377_s5 + $0x548] sm:$0xff] }
 0x105   :  { %v644_v30 = vld [vmem:[%s4377_s5 + $0x590] sm:$0xff]  ;;  %v641_v34 = vld [vmem:[%s4377_s5 + $0x578] sm:$0xff]  ;;  %v1892_v35 = vpack.c.bf16 %v642_v28, %v635_v27  ;;  %v670_v51 = vld [vmem:[%s4377_s5 + $0x660] sm:$0xff] }
 0x106   :  { %v677_v3 = vld [vmem:[%s4377_s5 + $0x698] sm:$0xff]  ;;  %v691_v16 = vld [vmem:[%s4377_s5 + $0x708] sm:$0xff]  ;;  %v690_v28 = vld [vmem:[%s4377_s5 + $0x700] sm:$0xff] }
 0x107   :  { %1855 = vmatpush1.bf16.msra.mxu1 %v1854_v45  ;;  %1983 = vmatpush1.bf16.msra.mxu0 %v1982_v46  ;;  %v2002_v45 = vpack.c.bf16 %v573_v39, %v566_v38  ;;  %v578_v46 = vld [vmem:[%s4377_s5 + $0x380] sm:$0xff]  ;;  %v643_v38 = vld [vmem:[%s4377_s5 + $0x588] sm:$0xff]  ;;  %v649_v39 = vld [vmem:[%s4377_s5 + $0x5b8] sm:$0xff] }
 0x108   :  { %1857 = vmatprep.subr.bf16.mxu1 %v1856_v48  ;;  %1985 = vmatprep.subr.bf16.mxu0 %v1984_v49  ;;  %v2004_v48 = vpack.c.bf16 %v588_v43, %v581_v42  ;;  %v580_v49 = vld [vmem:[%s4377_s5 + $0x390] sm:$0xff]  ;;  %v1878_v55 = vpack.c.bf16 %v585_v47, %v578_v46  ;;  %v658_v42 = vld [vmem:[%s4377_s5 + $0x600] sm:$0xff]  ;;  %v655_v46 = vld [vmem:[%s4377_s5 + $0x5e8] sm:$0xff]  ;;  %v1896_v47 = vpack.c.bf16 %v656_v40, %v649_v39 }
 0x109   :  { %v714_v39 = vld [vmem:[%s4377_s5 + $0x7c0] sm:$0xff] }
 0x10b   :  { %1859 = vmatpush1.bf16.msra.mxu1 %v1858_v56  ;;  %1987 = vmatpush1.bf16.msra.mxu0 %v1986_v57  ;;  %v2006_v56 = vpack.c.bf16 %v587_v50, %v580_v49  ;;  %v592_v57 = vld [vmem:[%s4377_s5 + $0x3f0] sm:$0xff]  ;;  %v657_v49 = vld [vmem:[%s4377_s5 + $0x5f8] sm:$0xff]  ;;  %v663_v50 = vld [vmem:[%s4377_s5 + $0x628] sm:$0xff] }
 0x10c   :  { %1861 = vmatprep.subr.bf16.mxu1 %v1860_v63  ;;  %1989 = vmatprep.subr.bf16.mxu0 %v1988_v0  ;;  %v2008_v63 = vpack.c.bf16 %v602_v54, %v595_v53  ;;  %v594_v0 = vld [vmem:[%s4377_s5 + $0x400] sm:$0xff]  ;;  %v1882_v6 = vpack.c.bf16 %v599_v60, %v592_v57  ;;  %v672_v53 = vld [vmem:[%s4377_s5 + $0x670] sm:$0xff]  ;;  %v1900_v57 = vpack.c.bf16 %v670_v51, %v663_v50  ;;  %v711_v51 = vld [vmem:[%s4377_s5 + $0x7a8] sm:$0xff] }
 0x10d   :  { %v2028_v60 = vpack.c.bf16 %v672_v53, %v665_v52  ;;  %v706_v52 = vld [vmem:[%s4377_s5 + $0x780] sm:$0xff]  ;;  %v713_v53 = vld [vmem:[%s4377_s5 + $0x7b8] sm:$0xff] }
 0x10f   :  { %1863 = vmatpush1.bf16.msra.mxu1 %v1862_v8  ;;  %1991 = vmatpush1.bf16.msra.mxu0 %v1990_v9  ;;  %v2010_v8 = vpack.c.bf16 %v601_v1, %v594_v0  ;;  %v606_v9 = vld [vmem:[%s4377_s5 + $0x460] sm:$0xff]  ;;  %v671_v0 = vld [vmem:[%s4377_s5 + $0x668] sm:$0xff] }
 0x110   :  { %1865 = vmatprep.subr.bf16.mxu1 %v1864_v12  ;;  %1993 = vmatprep.subr.bf16.mxu0 %v1992_v13  ;;  %v2012_v12 = vpack.c.bf16 %v616_v5, %v609_v4  ;;  %v608_v13 = vld [vmem:[%s4377_s5 + $0x470] sm:$0xff]  ;;  %v1886_v19 = vpack.c.bf16 %v613_v10, %v606_v9  ;;  %v679_v5 = vld [vmem:[%s4377_s5 + $0x6a8] sm:$0xff] }
 0x111   :  { %v684_v4 = vld [vmem:[%s4377_s5 + $0x6d0] sm:$0xff]  ;;  %v683_v10 = vld [vmem:[%s4377_s5 + $0x6c8] sm:$0xff] }
 0x112   :  { %v676_v9 = vld [vmem:[%s4377_s5 + $0x690] sm:$0xff] }
 0x113   :  { %1867 = vmatpush1.bf16.msra.mxu1 %v1866_v20  ;;  %1995 = vmatpush1.bf16.msra.mxu0 %v1994_v21  ;;  %v2014_v20 = vpack.c.bf16 %v615_v14, %v608_v13  ;;  %v620_v21 = vld [vmem:[%s4377_s5 + $0x4d0] sm:$0xff]  ;;  %v678_v13 = vld [vmem:[%s4377_s5 + $0x6a0] sm:$0xff]  ;;  %v685_v14 = vld [vmem:[%s4377_s5 + $0x6d8] sm:$0xff] }
 0x114   :  { %1869 = vmatprep.subr.bf16.mxu1 %v1868_v24  ;;  %1997 = vmatprep.subr.bf16.mxu0 %v1996_v25  ;;  %v2016_v24 = vpack.c.bf16 %v630_v18, %v623_v17  ;;  %v622_v25 = vld [vmem:[%s4377_s5 + $0x4e0] sm:$0xff]  ;;  %v1890_v31 = vpack.c.bf16 %v627_v22, %v620_v21  ;;  %v2034_v15 = vpack.c.bf16 %v685_v14, %v678_v13  ;;  %v693_v18 = vld [vmem:[%s4377_s5 + $0x718] sm:$0xff]  ;;  %v735_v13 = vld [vmem:[%s4377_s5 + $0x868] sm:$0xff] }
 0x115   :  { %v698_v17 = vld [vmem:[%s4377_s5 + $0x740] sm:$0xff] }
 0x116   :  { %v3316_v22 = vld [vmem:[%s4376_s4] sm:$0xf] }
 0x117   :  { %1871 = vmatpush1.bf16.msra.mxu1 %v1870_v32  ;;  %1999 = vmatpush1.bf16.msra.mxu0 %v1998_v33  ;;  %v2018_v32 = vpack.c.bf16 %v629_v26, %v622_v25  ;;  %v634_v33 = vld [vmem:[%s4377_s5 + $0x540] sm:$0xff]  ;;  %v298_v25 = vsub.s32 3, %v2916_v58 }
 0x118   :  { %1873 = vmatprep.subr.bf16.mxu1 %v1872_v36  ;;  %2001 = vmatprep.subr.bf16.mxu0 %v2000_v37  ;;  %v2020_v36 = vpack.c.bf16 %v644_v30, %v637_v29  ;;  %v636_v37 = vld [vmem:[%s4377_s5 + $0x550] sm:$0xff]  ;;  %v1894_v43 = vpack.c.bf16 %v641_v34, %v634_v33  ;;  %v697_v29 = vld [vmem:[%s4377_s5 + $0x738] sm:$0xff]  ;;  %v699_v34 = vld [vmem:[%s4377_s5 + $0x748] sm:$0xff] }
 0x119   :  { %v692_v33 = vld [vmem:[%s4377_s5 + $0x710] sm:$0xff]  ;;  %v3352_v40 = vrot.slane %v3316_v22, %v298_v25  ;;  %v742_v14 = vld [vmem:[%s4377_s5 + $0x8a0] sm:$0xff] }
 0x11b   :  { %1875 = vmatpush1.bf16.msra.mxu1 %v1874_v44  ;;  %2003 = vmatpush1.bf16.msra.mxu0 %v2002_v45  ;;  %v2022_v44 = vpack.c.bf16 %v643_v38, %v636_v37  ;;  %v648_v45 = vld [vmem:[%s4377_s5 + $0x5b0] sm:$0xff]  ;;  %v707_v38 = vld [vmem:[%s4377_s5 + $0x788] sm:$0xff] }
 0x11c   :  { %1877 = vmatprep.subr.bf16.mxu1 %v1876_v7  ;;  %2005 = vmatprep.subr.bf16.mxu0 %v2004_v48  ;;  %v2024_v7 = vpack.c.bf16 %v658_v42, %v651_v41  ;;  %v650_v48 = vld [vmem:[%s4377_s5 + $0x5c0] sm:$0xff]  ;;  %v1898_v54 = vpack.c.bf16 %v655_v46, %v648_v45  ;;  %v712_v37 = vld [vmem:[%s4377_s5 + $0x7b0] sm:$0xff]  ;;  %v2040_v50 = vpack.c.bf16 %v714_v39, %v707_v38  ;;  %v755_v38 = vld [vmem:[%s4377_s5 + $0x908] sm:$0xff] }
 0x11d   :  { %v704_v45 = vld [vmem:[%s4377_s5 + $0x770] sm:$0xff]  ;;  %v761_v39 = vld [vmem:[%s4377_s5 + $0x938] sm:$0xff] }
 0x11f   :  { %1879 = vmatpush1.bf16.msra.mxu1 %v1878_v55  ;;  %2007 = vmatpush1.bf16.msra.mxu0 %v2006_v56  ;;  %v2026_v55 = vpack.c.bf16 %v657_v49, %v650_v48  ;;  %v662_v56 = vld [vmem:[%s4377_s5 + $0x620] sm:$0xff] }
 0x120   :  { %1881 = vmatprep.subr.bf16.mxu1 %v1880_v62  ;;  %2009 = vmatprep.subr.bf16.mxu0 %v2008_v63  ;;  %v669_v62 = vld [vmem:[%s4377_s5 + $0x658] sm:$0xff]  ;;  %v664_v63 = vld [vmem:[%s4377_s5 + $0x630] sm:$0xff] }
 0x121   :  { %v1902_v1 = vpack.c.bf16 %v669_v62, %v662_v56  ;;  %v2030_v2 = vpack.c.bf16 %v671_v0, %v664_v63  ;;  %v719_v56 = vld [vmem:[%s4377_s5 + $0x7e8] sm:$0xff]  ;;  %v726_v62 = vld [vmem:[%s4377_s5 + $0x820] sm:$0xff]  ;;  %v721_v63 = vld [vmem:[%s4377_s5 + $0x7f8] sm:$0xff] }
 0x122   :  { %v728_v0 = vld [vmem:[%s4377_s5 + $0x830] sm:$0xff] }
 0x123   :  { %1883 = vmatpush1.bf16.msra.mxu1 %v1882_v6  ;;  %2011 = vmatpush1.bf16.msra.mxu0 %v2010_v8  ;;  %v1904_v6 = vpack.c.bf16 %v684_v4, %v677_v3  ;;  %v686_v8 = vld [vmem:[%s4377_s5 + $0x6e0] sm:$0xff]  ;;  %v2042_v3 = vpack.c.bf16 %v713_v53, %v706_v52  ;;  %v769_v53 = vld [vmem:[%s4377_s5 + $0x978] sm:$0xff] }
 0x124   :  { %1885 = vmatprep.subr.bf16.mxu1 %v1884_v11  ;;  %2013 = vmatprep.subr.bf16.mxu0 %v2012_v12  ;;  %v2032_v11 = vpack.c.bf16 %v686_v8, %v679_v5  ;;  %v1906_v12 = vpack.c.bf16 %v683_v10, %v676_v9  ;;  %v718_v4 = vld [vmem:[%s4377_s5 + $0x7e0] sm:$0xff]  ;;  %v725_v5 = vld [vmem:[%s4377_s5 + $0x818] sm:$0xff]  ;;  %v727_v8 = vld [vmem:[%s4377_s5 + $0x828] sm:$0xff]  ;;  %v1916_v10 = vpack.c.bf16 %v726_v62, %v719_v56 }
 0x125   :  { %v733_v9 = vld [vmem:[%s4377_s5 + $0x858] sm:$0xff]  ;;  %v762_v52 = vld [vmem:[%s4377_s5 + $0x940] sm:$0xff]  ;;  %v784_v62 = vld [vmem:[%s4377_s5 + $0x9f0] sm:$0xff] }
 0x126   :  { %v782_v56 = vld [vmem:[%s4377_s5 + $0x9e0] sm:$0xff] }
 0x127   :  { %1887 = vmatpush1.bf16.msra.mxu1 %v1886_v19  ;;  %2015 = vmatpush1.bf16.msra.mxu0 %v2014_v20  ;;  %v1908_v19 = vpack.c.bf16 %v698_v17, %v691_v16  ;;  %v700_v20 = vld [vmem:[%s4377_s5 + $0x750] sm:$0xff]  ;;  %v1918_v16 = vpack.c.bf16 %v725_v5, %v718_v4 }
 0x128   :  { %1889 = vmatprep.subr.bf16.mxu1 %v1888_v23  ;;  %2017 = vmatprep.subr.bf16.mxu0 %v2016_v24  ;;  %v2036_v21 = vpack.c.bf16 %v700_v20, %v693_v18  ;;  %v287_v23 = vrot.slane %v3316_v22, %v2919_v59  ;;  %v291_v24 = vrot.slane %v3316_v22, %v2925_v61  ;;  %v732_v18 = vld [vmem:[%s4377_s5 + $0x850] sm:$0xff] }
 0x12b   :  { %1891 = vmatpush1.bf16.msra.mxu1 %v1890_v31  ;;  %2019 = vmatpush1.bf16.msra.mxu0 %v2018_v32 }
 0x12c   :  { %1893 = vmatprep.subr.bf16.mxu1 %v1892_v35  ;;  %2021 = vmatprep.subr.bf16.mxu0 %v2020_v36  ;;  %v705_v35 = vld [vmem:[%s4377_s5 + $0x778] sm:$0xff] }
 0x12d   :  { %v1912_v49 = vpack.c.bf16 %v712_v37, %v705_v35  ;;  %v748_v37 = vld [vmem:[%s4377_s5 + $0x8d0] sm:$0xff] }
 0x12f   :  { %1895 = vmatpush1.bf16.msra.mxu1 %v1894_v43  ;;  %2023 = vmatpush1.bf16.msra.mxu0 %v2022_v44  ;;  %v1910_v43 = vpack.c.bf16 %v697_v29, %v690_v28  ;;  %v2038_v44 = vpack.c.bf16 %v699_v34, %v692_v33  ;;  %v754_v28 = vld [vmem:[%s4377_s5 + $0x900] sm:$0xff]  ;;  %v749_v29 = vld [vmem:[%s4377_s5 + $0x8d8] sm:$0xff] }
 0x130   :  { %1897 = vmatprep.subr.bf16.mxu1 %v1896_v47  ;;  %2025 = vmatprep.subr.bf16.mxu0 %v2024_v7  ;;  %v746_v33 = vld [vmem:[%s4377_s5 + $0x8c0] sm:$0xff]  ;;  %v753_v34 = vld [vmem:[%s4377_s5 + $0x8f8] sm:$0xff] }
 0x133   :  { %1899 = vmatpush1.bf16.msra.mxu1 %v1898_v54  ;;  %2027 = vmatpush1.bf16.msra.mxu0 %v2026_v55 }
 0x134   :  { %1901 = vmatprep.subr.bf16.mxu1 %v1900_v57  ;;  %2029 = vmatprep.subr.bf16.mxu0 %v2028_v60 }
 0x137   :  { %1903 = vmatpush1.bf16.msra.mxu1 %v1902_v1  ;;  %2031 = vmatpush1.bf16.msra.mxu0 %v2030_v2  ;;  %v1914_v2 = vpack.c.bf16 %v711_v51, %v704_v45  ;;  %v1926_v45 = vpack.c.bf16 %v753_v34, %v746_v33 }
 0x138   :  { %1905 = vmatprep.subr.bf16.mxu1 %v1904_v6  ;;  %2033 = vmatprep.subr.bf16.mxu0 %v2032_v11  ;;  %v720_v6 = vld [vmem:[%s4377_s5 + $0x7f0] sm:$0xff]  ;;  %v2044_v11 = vpack.c.bf16 %v728_v0, %v721_v63  ;;  %v2058_v0 = vpack.c.bf16 %v769_v53, %v762_v52  ;;  %v831_v52 = vld [vmem:[%s4377_s5 + $0xb68] sm:$0xff]  ;;  %v838_v53 = vld [vmem:[%s4377_s5 + $0xba0] sm:$0xff] }
 0x139   :  { %v2046_v17 = vpack.c.bf16 %v727_v8, %v720_v6  ;;  %v776_v6 = vld [vmem:[%s4377_s5 + $0x9b0] sm:$0xff]  ;;  %v783_v8 = vld [vmem:[%s4377_s5 + $0x9e8] sm:$0xff] }
 0x13b   :  { %1907 = vmatpush1.bf16.msra.mxu1 %v1906_v12  ;;  %2035 = vmatpush1.bf16.msra.mxu0 %v2034_v15  ;;  %v740_v12 = vld [vmem:[%s4377_s5 + $0x890] sm:$0xff] }
 0x13c   :  { %1909 = vmatprep.subr.bf16.mxu1 %v1908_v19  ;;  %2037 = vmatprep.subr.bf16.mxu0 %v2036_v21  ;;  %v739_v19 = vld [vmem:[%s4377_s5 + $0x888] sm:$0xff]  ;;  %v1920_v20 = vpack.c.bf16 %v740_v12, %v733_v9  ;;  %v2048_v21 = vpack.c.bf16 %v742_v14, %v735_v13  ;;  %v789_v9 = vld [vmem:[%s4377_s5 + $0xa18] sm:$0xff]  ;;  %v798_v12 = vld [vmem:[%s4377_s5 + $0xa60] sm:$0xff]  ;;  %v2062_v14 = vpack.c.bf16 %v783_v8, %v776_v6 }
 0x13d   :  { %v845_v6 = vld [vmem:[%s4377_s5 + $0xbd8] sm:$0xff]  ;;  %v852_v8 = vld [vmem:[%s4377_s5 + $0xc10] sm:$0xff] }
 0x1d1   :  { %v370_v26 = vpop.f32.mrb[0].mxu1  ;;  %v3323_v27 = vpop.f32.mrb[4].mxu0 }
 0x1d2   :  { %v371_v30 = vadd.f32 %v370_v26, %v287_v23  ;;  %v372_v31 = vpop.f32.mrb[1].mxu1  ;;  %v449_v32 = vpop.f32.mrb[5].mxu0  ;;  %v747_v26 = vld [vmem:[%s4377_s5 + $0x8c8] sm:$0xff] }
 0x1d3   :  { %v373_v36 = vadd.f32 %v372_v31, %v291_v24  ;;  %v450_v57 = vadd.f32 %v449_v32, %v3352_v40  ;;  %v1922_v31 = vpack.c.bf16 %v739_v19, %v732_v18  ;;  %v1924_v35 = vpack.c.bf16 %v754_v28, %v747_v26  ;;  %v805_v26 = vld [vmem:[%s4377_s5 + $0xa98] sm:$0xff]  ;;  %v812_v28 = vld [vmem:[%s4377_s5 + $0xad0] sm:$0xff] }
 0x1d4   :  { %v3361_v47 = vmax.f32 %v371_v30, 0.0  ;;  %v756_v30 = vld [vmem:[%s4377_s5 + $0x910] sm:$0xff]  ;;  %v2068_v34 = vpack.c.bf16 %v812_v28, %v805_v26 }
 0x1d5   :  { %v3354_v41 = vmax.f32 %v373_v36, 0.0  ;;  %v376_v42 = vpop.f32.mrb[2].mxu1  ;;  %v3359_v46 = vpop.f32.mrb[6].mxu0  ;;  %v3421_v15 = vmax.f32 %v450_v57, 0.0  ;;  %v2052_v36 = vpack.c.bf16 %v756_v30, %v749_v29  ;;  %v777_v57 = vld [vmem:[%s4377_s5 + $0x9b8] sm:$0xff] }
 0x1d6   :  { %v377_v7 = vadd.f32 %v376_v42, %v287_v23  ;;  %v378_v48 = vpop.f32.mrb[3].mxu1  ;;  %v3372_v54 = vpop.f32.mrb[7].mxu0  ;;  %v734_v23 = vld [vmem:[%s4377_s5 + $0x860] sm:$0xff]  ;;  %v768_v42 = vld [vmem:[%s4377_s5 + $0x970] sm:$0xff]  ;;  %v2060_v5 = vpack.c.bf16 %v784_v62, %v777_v57 }
 0x1d7   :  { %v379_v55 = vadd.f32 %v378_v48, %v291_v24  ;;  %1015 = vmatprep.mubr.f32.mxu1 %v3354_v41  ;;  %1169 = vmatprep.mubr.f32.mxu0 %v3354_v41  ;;  %v741_v24 = vld [vmem:[%s4377_s5 + $0x898] sm:$0xff]  ;;  %v760_v48 = vld [vmem:[%s4377_s5 + $0x930] sm:$0xff] }
 0x1d8   :  { %v3380_v60 = vmax.f32 %v377_v7, 0.0  ;;  %1016 = vmatmul.mubr.f32.vlgmr.msra.gmra.mrb[4].mxu1 %v3361_v47  ;;  %1170 = vmatmul.mubr.f32.vlgmr.msra.gmra.mrb[8].mxu0 %v3361_v47  ;;  %v2050_v32 = vpack.c.bf16 %v741_v24, %v734_v23  ;;  %v2054_v7 = vpack.c.bf16 %v755_v38, %v748_v37  ;;  %v803_v23 = vld [vmem:[%s4377_s5 + $0xa88] sm:$0xff]  ;;  %v810_v24 = vld [vmem:[%s4377_s5 + $0xac0] sm:$0xff]  ;;  %v817_v37 = vld [vmem:[%s4377_s5 + $0xaf8] sm:$0xff] }
 0x1d9   :  { %v3393_v1 = vmax.f32 %v379_v55, 0.0  ;;  %1911 = vmatpush1.bf16.msra.mxu1 %v1910_v43  ;;  %2039 = vmatpush1.bf16.msra.mxu0 %v2038_v44  ;;  %v763_v43 = vld [vmem:[%s4377_s5 + $0x948] sm:$0xff]  ;;  %v770_v44 = vld [vmem:[%s4377_s5 + $0x980] sm:$0xff]  ;;  %v1940_v33 = vpack.c.bf16 %v810_v24, %v803_v23  ;;  %v824_v38 = vld [vmem:[%s4377_s5 + $0xb30] sm:$0xff] }
 0x1da   :  { %1913 = vmatprep.subr.bf16.mxu1 %v1912_v49  ;;  %2041 = vmatprep.subr.bf16.mxu0 %v2040_v50  ;;  %v767_v49 = vld [vmem:[%s4377_s5 + $0x968] sm:$0xff]  ;;  %v1928_v50 = vpack.c.bf16 %v768_v42, %v761_v39  ;;  %v2056_v51 = vpack.c.bf16 %v770_v44, %v763_v43  ;;  %v826_v42 = vld [vmem:[%s4377_s5 + $0xb40] sm:$0xff]  ;;  %v861_v23 = vld [vmem:[%s4377_s5 + $0xc58] sm:$0xff] }
 0x1db   :  { %1021 = vmatprep.mubr.f32.mxu1 %v3393_v1  ;;  %1175 = vmatprep.mubr.f32.mxu0 %v3393_v1  ;;  %v775_v55 = vld [vmem:[%s4377_s5 + $0x9a8] sm:$0xff]  ;;  %v1930_v63 = vpack.c.bf16 %v767_v49, %v760_v48  ;;  %v1944_v48 = vpack.c.bf16 %v824_v38, %v817_v37  ;;  %v868_v24 = vld [vmem:[%s4377_s5 + $0xc90] sm:$0xff]  ;;  %v882_v38 = vld [vmem:[%s4377_s5 + $0xd00] sm:$0xff] }
 0x1dc   :  { %1022 = vmatmul.mubr.f32.gmra.mrb[6].mxu1 %v3380_v60  ;;  %1176 = vmatmul.mubr.f32.gmra.mrb[10].mxu0 %v3380_v60  ;;  %v1932_v4 = vpack.c.bf16 %v782_v56, %v775_v55  ;;  %v819_v39 = vld [vmem:[%s4377_s5 + $0xb08] sm:$0xff]  ;;  %v833_v55 = vld [vmem:[%s4377_s5 + $0xb78] sm:$0xff]  ;;  %v840_v56 = vld [vmem:[%s4377_s5 + $0xbb0] sm:$0xff] }
 0x1dd   :  { %1915 = vmatpush1.bf16.msra.mxu1 %v1914_v2  ;;  %2043 = vmatpush1.bf16.msra.mxu0 %v2042_v3  ;;  %v774_v2 = vld [vmem:[%s4377_s5 + $0x9a0] sm:$0xff]  ;;  %v781_v3 = vld [vmem:[%s4377_s5 + $0x9d8] sm:$0xff]  ;;  %v2072_v49 = vpack.c.bf16 %v826_v42, %v819_v39  ;;  %v875_v37 = vld [vmem:[%s4377_s5 + $0xcc8] sm:$0xff] }
 0x1de   :  { %1092 = vmatprep.mubr.f32.mxu1 %v3421_v15  ;;  %1246 = vmatprep.mubr.f32.mxu0 %v3421_v15  ;;  %v1934_v13 = vpack.c.bf16 %v781_v3, %v774_v2  ;;  %v1948_v2 = vpack.c.bf16 %v838_v53, %v831_v52  ;;  %v2076_v3 = vpack.c.bf16 %v840_v56, %v833_v55  ;;  %v889_v52 = vld [vmem:[%s4377_s5 + $0xd38] sm:$0xff]  ;;  %v896_v53 = vld [vmem:[%s4377_s5 + $0xd70] sm:$0xff] }
 0x1df   :  { %1917 = vmatprep.subr.bf16.mxu1 %v1916_v10  ;;  %2045 = vmatprep.subr.bf16.mxu0 %v2044_v11  ;;  %v796_v10 = vld [vmem:[%s4377_s5 + $0xa50] sm:$0xff]  ;;  %v791_v11 = vld [vmem:[%s4377_s5 + $0xa28] sm:$0xff] }
 0x1e0   :  { %v1936_v18 = vpack.c.bf16 %v796_v10, %v789_v9  ;;  %v2064_v19 = vpack.c.bf16 %v798_v12, %v791_v11  ;;  %v847_v9 = vld [vmem:[%s4377_s5 + $0xbe8] sm:$0xff]  ;;  %v854_v10 = vld [vmem:[%s4377_s5 + $0xc20] sm:$0xff] }
 0x1e1   :  { %1919 = vmatpush1.bf16.msra.mxu1 %v1918_v16  ;;  %2047 = vmatpush1.bf16.msra.mxu0 %v2046_v17  ;;  %v788_v16 = vld [vmem:[%s4377_s5 + $0xa10] sm:$0xff]  ;;  %v795_v17 = vld [vmem:[%s4377_s5 + $0xa48] sm:$0xff] }
 0x1e2   :  { %1921 = vmatprep.subr.bf16.mxu1 %v1920_v20  ;;  %2049 = vmatprep.subr.bf16.mxu0 %v2048_v21  ;;  %v790_v20 = vld [vmem:[%s4377_s5 + $0xa20] sm:$0xff]  ;;  %v797_v21 = vld [vmem:[%s4377_s5 + $0xa58] sm:$0xff]  ;;  %v1938_v29 = vpack.c.bf16 %v795_v17, %v788_v16  ;;  %v1952_v16 = vpack.c.bf16 %v852_v8, %v845_v6  ;;  %v2080_v17 = vpack.c.bf16 %v854_v10, %v847_v9  ;;  %v908_v6 = vld [vmem:[%s4377_s5 + $0xdd0] sm:$0xff] }
 0x1e3   :  { %v2066_v30 = vpack.c.bf16 %v797_v21, %v790_v20  ;;  %v859_v20 = vld [vmem:[%s4377_s5 + $0xc48] sm:$0xff]  ;;  %v866_v21 = vld [vmem:[%s4377_s5 + $0xc80] sm:$0xff] }
 0x1e4   :  { %v903_v8 = vld [vmem:[%s4377_s5 + $0xda8] sm:$0xff]  ;;  %v910_v9 = vld [vmem:[%s4377_s5 + $0xde0] sm:$0xff] }
 0x1e5   :  { %1923 = vmatpush1.bf16.msra.mxu1 %v1922_v31  ;;  %2051 = vmatpush1.bf16.msra.mxu0 %v2050_v32  ;;  %v802_v31 = vld [vmem:[%s4377_s5 + $0xa80] sm:$0xff]  ;;  %v809_v32 = vld [vmem:[%s4377_s5 + $0xab8] sm:$0xff] }
 0x1e6   :  { %1925 = vmatprep.subr.bf16.mxu1 %v1924_v35  ;;  %2053 = vmatprep.subr.bf16.mxu0 %v2052_v36  ;;  %v804_v35 = vld [vmem:[%s4377_s5 + $0xa90] sm:$0xff]  ;;  %v811_v36 = vld [vmem:[%s4377_s5 + $0xac8] sm:$0xff]  ;;  %v1942_v43 = vpack.c.bf16 %v809_v32, %v802_v31  ;;  %v1956_v31 = vpack.c.bf16 %v866_v21, %v859_v20  ;;  %v2084_v32 = vpack.c.bf16 %v868_v24, %v861_v23 }
 0x1e7   :  { %v2070_v44 = vpack.c.bf16 %v811_v36, %v804_v35  ;;  %v873_v35 = vld [vmem:[%s4377_s5 + $0xcb8] sm:$0xff]  ;;  %v880_v36 = vld [vmem:[%s4377_s5 + $0xcf0] sm:$0xff]  ;;  %v471_v20 = vld [vmem:[%s4377_s5 + $0x28] sm:$0xff] }
 0x1e8   :  { %v584_v21 = vld [vmem:[%s4377_s5 + $0x3b0] sm:$0xff]  ;;  %v591_v23 = vld [vmem:[%s4377_s5 + $0x3e8] sm:$0xff] }
 0x1e9   :  { %1927 = vmatpush1.bf16.msra.mxu1 %v1926_v45  ;;  %2055 = vmatpush1.bf16.msra.mxu0 %v2054_v7  ;;  %v816_v45 = vld [vmem:[%s4377_s5 + $0xaf0] sm:$0xff]  ;;  %v823_v7 = vld [vmem:[%s4377_s5 + $0xb28] sm:$0xff] }
 0x1ea   :  { %1929 = vmatprep.subr.bf16.mxu1 %v1928_v50  ;;  %2057 = vmatprep.subr.bf16.mxu0 %v2056_v51  ;;  %v818_v50 = vld [vmem:[%s4377_s5 + $0xb00] sm:$0xff]  ;;  %v825_v51 = vld [vmem:[%s4377_s5 + $0xb38] sm:$0xff]  ;;  %v1946_v57 = vpack.c.bf16 %v823_v7, %v816_v45  ;;  %v1960_v45 = vpack.c.bf16 %v880_v36, %v873_v35  ;;  %v2088_v7 = vpack.c.bf16 %v882_v38, %v875_v37  ;;  %v492_v36 = vld [vmem:[%s4377_s5 + $0xd0] sm:$0xff] }
 0x1eb   :  { %v2074_v62 = vpack.c.bf16 %v825_v51, %v818_v50  ;;  %v887_v50 = vld [vmem:[%s4377_s5 + $0xd28] sm:$0xff]  ;;  %v894_v51 = vld [vmem:[%s4377_s5 + $0xd60] sm:$0xff]  ;;  %v485_v35 = vld [vmem:[%s4377_s5 + $0x98] sm:$0xff] }
 0x1ed   :  { %1931 = vmatpush1.bf16.msra.mxu1 %v1930_v63  ;;  %2059 = vmatpush1.bf16.msra.mxu0 %v2058_v0  ;;  %v830_v63 = vld [vmem:[%s4377_s5 + $0xb60] sm:$0xff]  ;;  %v837_v0 = vld [vmem:[%s4377_s5 + $0xb98] sm:$0xff] }
 0x1ee   :  { %1933 = vmatprep.subr.bf16.mxu1 %v1932_v4  ;;  %2061 = vmatprep.subr.bf16.mxu0 %v2060_v5  ;;  %v832_v4 = vld [vmem:[%s4377_s5 + $0xb70] sm:$0xff]  ;;  %v839_v5 = vld [vmem:[%s4377_s5 + $0xba8] sm:$0xff]  ;;  %v1950_v11 = vpack.c.bf16 %v837_v0, %v830_v63  ;;  %v294_v63 = vsub.s32 2, %v2916_v58  ;;  %v1964_v0 = vpack.c.bf16 %v894_v51, %v887_v50  ;;  %v506_v51 = vld [vmem:[%s4377_s5 + $0x140] sm:$0xff] }
 0x1ef   :  { %v2078_v12 = vpack.c.bf16 %v839_v5, %v832_v4  ;;  %v895_v4 = vld [vmem:[%s4377_s5 + $0xd68] sm:$0xff]  ;;  %v901_v5 = vld [vmem:[%s4377_s5 + $0xd98] sm:$0xff] }
 0x1f0   :  { %v499_v50 = vld [vmem:[%s4377_s5 + $0x108] sm:$0xff] }
 0x1f1   :  { %1935 = vmatpush1.bf16.msra.mxu1 %v1934_v13  ;;  %2063 = vmatpush1.bf16.msra.mxu0 %v2062_v14  ;;  %v844_v13 = vld [vmem:[%s4377_s5 + $0xbd0] sm:$0xff]  ;;  %v851_v14 = vld [vmem:[%s4377_s5 + $0xc08] sm:$0xff] }
 0x1f2   :  { %1937 = vmatprep.subr.bf16.mxu1 %v1936_v18  ;;  %2065 = vmatprep.subr.bf16.mxu0 %v2064_v19  ;;  %v846_v18 = vld [vmem:[%s4377_s5 + $0xbe0] sm:$0xff]  ;;  %v853_v19 = vld [vmem:[%s4377_s5 + $0xc18] sm:$0xff]  ;;  %v1954_v26 = vpack.c.bf16 %v851_v14, %v844_v13  ;;  %v907_v13 = vld [vmem:[%s4377_s5 + $0xdc8] sm:$0xff]  ;;  %v295_v14 = vrot.slane %v3316_v22, %v294_v63 }
 0x1f3   :  { %v2082_v28 = vpack.c.bf16 %v853_v19, %v846_v18  ;;  %v902_v18 = vld [vmem:[%s4377_s5 + $0xda0] sm:$0xff]  ;;  %v909_v19 = vld [vmem:[%s4377_s5 + $0xdd8] sm:$0xff] }
 0x1f4   :  { %v478_v22 = vld [vmem:[%s4377_s5 + $0x60] sm:$0xff]  ;;  %v454_v38 = vadd.f32 %v3359_v46, %v295_v14 }
 0x1f5   :  { %1939 = vmatpush1.bf16.msra.mxu1 %v1938_v29  ;;  %2067 = vmatpush1.bf16.msra.mxu0 %v2066_v30  ;;  %v858_v29 = vld [vmem:[%s4377_s5 + $0xc40] sm:$0xff]  ;;  %v865_v30 = vld [vmem:[%s4377_s5 + $0xc78] sm:$0xff] }
 0x1f6   :  { %1941 = vmatprep.subr.bf16.mxu1 %v1940_v33  ;;  %2069 = vmatprep.subr.bf16.mxu0 %v2068_v34  ;;  %v860_v33 = vld [vmem:[%s4377_s5 + $0xc50] sm:$0xff]  ;;  %v867_v34 = vld [vmem:[%s4377_s5 + $0xc88] sm:$0xff]  ;;  %v1958_v39 = vpack.c.bf16 %v865_v30, %v858_v29  ;;  %v2100_v29 = vpack.c.bf16 %v478_v22, %v471_v20  ;;  %v2228_v30 = vpack.c.bf16 %v591_v23, %v584_v21  ;;  %v486_v46 = vld [vmem:[%s4377_s5 + $0xa0] sm:$0xff] }
 0x1f7   :  { %v2086_v42 = vpack.c.bf16 %v867_v34, %v860_v33  ;;  %v456_v33 = vadd.f32 %v3372_v54, %v3352_v40  ;;  %v472_v34 = vld [vmem:[%s4377_s5 + $0x30] sm:$0xff]  ;;  %v598_v40 = vld [vmem:[%s4377_s5 + $0x420] sm:$0xff]  ;;  %v605_v54 = vld [vmem:[%s4377_s5 + $0x458] sm:$0xff] }
 0x1f8   :  { %v534_v20 = vld [vmem:[%s4377_s5 + $0x220] sm:$0xff]  ;;  %v640_v22 = vld [vmem:[%s4377_s5 + $0x570] sm:$0xff]  ;;  %v647_v21 = vld [vmem:[%s4377_s5 + $0x5a8] sm:$0xff] }
 0x1f9   :  { %1943 = vmatpush1.bf16.msra.mxu1 %v1942_v43  ;;  %2071 = vmatpush1.bf16.msra.mxu0 %v2070_v44  ;;  %v872_v43 = vld [vmem:[%s4377_s5 + $0xcb0] sm:$0xff]  ;;  %v879_v44 = vld [vmem:[%s4377_s5 + $0xce8] sm:$0xff] }
 0x1fa   :  { %1945 = vmatprep.subr.bf16.mxu1 %v1944_v48  ;;  %2073 = vmatprep.subr.bf16.mxu0 %v2072_v49  ;;  %v874_v48 = vld [vmem:[%s4377_s5 + $0xcc0] sm:$0xff]  ;;  %v881_v49 = vld [vmem:[%s4377_s5 + $0xcf8] sm:$0xff]  ;;  %v1962_v55 = vpack.c.bf16 %v879_v44, %v872_v43  ;;  %v484_v43 = vld [vmem:[%s4377_s5 + $0x90] sm:$0xff] }
 0x1fb   :  { %v2090_v56 = vpack.c.bf16 %v881_v49, %v874_v48  ;;  %v491_v44 = vld [vmem:[%s4377_s5 + $0xc8] sm:$0xff]  ;;  %v2232_v48 = vpack.c.bf16 %v605_v54, %v598_v40  ;;  %v493_v49 = vld [vmem:[%s4377_s5 + $0xd8] sm:$0xff]  ;;  %v540_v54 = vld [vmem:[%s4377_s5 + $0x250] sm:$0xff] }
 0x1fd   :  { %1947 = vmatpush1.bf16.msra.mxu1 %v1946_v57  ;;  %2075 = vmatpush1.bf16.msra.mxu0 %v2074_v62  ;;  %v886_v57 = vld [vmem:[%s4377_s5 + $0xd20] sm:$0xff]  ;;  %v893_v62 = vld [vmem:[%s4377_s5 + $0xd58] sm:$0xff] }
 0x1fe   :  { %1949 = vmatprep.subr.bf16.mxu1 %v1948_v2  ;;  %2077 = vmatprep.subr.bf16.mxu0 %v2076_v3  ;;  %v2092_v2 = vpack.c.bf16 %v896_v53, %v889_v52  ;;  %v888_v3 = vld [vmem:[%s4377_s5 + $0xd30] sm:$0xff]  ;;  %v1966_v10 = vpack.c.bf16 %v893_v62, %v886_v57  ;;  %v619_v53 = vld [vmem:[%s4377_s5 + $0x4c8] sm:$0xff]  ;;  %v2234_v57 = vpack.c.bf16 %v493_v49, %v486_v46  ;;  %v498_v62 = vld [vmem:[%s4377_s5 + $0x100] sm:$0xff] }
 0x1ff   :  { %v612_v52 = vld [vmem:[%s4377_s5 + $0x490] sm:$0xff]  ;;  %v675_v49 = vld [vmem:[%s4377_s5 + $0x688] sm:$0xff] }
 0x200   :  { %v668_v46 = vld [vmem:[%s4377_s5 + $0x650] sm:$0xff] }
 0x201   :  { %1951 = vmatpush1.bf16.msra.mxu1 %v1950_v11  ;;  %2079 = vmatpush1.bf16.msra.mxu0 %v2078_v12  ;;  %v2094_v11 = vpack.c.bf16 %v895_v4, %v888_v3  ;;  %v900_v12 = vld [vmem:[%s4377_s5 + $0xd90] sm:$0xff]  ;;  %v2236_v3 = vpack.c.bf16 %v619_v53, %v612_v52  ;;  %v554_v52 = vld [vmem:[%s4377_s5 + $0x2c0] sm:$0xff]  ;;  %v561_v53 = vld [vmem:[%s4377_s5 + $0x2f8] sm:$0xff] }
 0x202   :  { %1953 = vmatprep.subr.bf16.mxu1 %v1952_v16  ;;  %2081 = vmatprep.subr.bf16.mxu0 %v2080_v17  ;;  %v1968_v16 = vpack.c.bf16 %v908_v6, %v901_v5  ;;  %v2096_v17 = vpack.c.bf16 %v910_v9, %v903_v8  ;;  %v1970_v24 = vpack.c.bf16 %v907_v13, %v900_v12  ;;  %v500_v4 = vld [vmem:[%s4377_s5 + $0x110] sm:$0xff]  ;;  %v507_v5 = vld [vmem:[%s4377_s5 + $0x148] sm:$0xff]  ;;  %v513_v6 = vld [vmem:[%s4377_s5 + $0x178] sm:$0xff] }
 0x203   :  { %v520_v8 = vld [vmem:[%s4377_s5 + $0x1b0] sm:$0xff]  ;;  %v626_v9 = vld [vmem:[%s4377_s5 + $0x500] sm:$0xff]  ;;  %v2238_v12 = vpack.c.bf16 %v507_v5, %v500_v4  ;;  %v689_v5 = vld [vmem:[%s4377_s5 + $0x6f8] sm:$0xff] }
 0x204   :  { %v512_v13 = vld [vmem:[%s4377_s5 + $0x170] sm:$0xff]  ;;  %v682_v4 = vld [vmem:[%s4377_s5 + $0x6c0] sm:$0xff] }
 0x205   :  { %1955 = vmatpush1.bf16.msra.mxu1 %v1954_v26  ;;  %2083 = vmatpush1.bf16.msra.mxu0 %v2082_v28  ;;  %v2098_v26 = vpack.c.bf16 %v909_v19, %v902_v18  ;;  %v448_v28 = vadd.f32 %v3323_v27, %v295_v14  ;;  %v479_v27 = vld [vmem:[%s4377_s5 + $0x68] sm:$0xff]  ;;  %v521_v18 = vld [vmem:[%s4377_s5 + $0x1b8] sm:$0xff] }
 0x206   :  { %1957 = vmatprep.subr.bf16.mxu1 %v1956_v31  ;;  %2085 = vmatprep.subr.bf16.mxu0 %v2084_v32  ;;  %v470_v31 = vld [vmem:[%s4377_s5 + $0x20] sm:$0xff]  ;;  %v477_v32 = vld [vmem:[%s4377_s5 + $0x58] sm:$0xff]  ;;  %v519_v14 = vld [vmem:[%s4377_s5 + $0x1a8] sm:$0xff] }
 0x207   :  { %v3770_v37 = vmax.f32 %v448_v28, 0.0  ;;  %v527_v19 = vld [vmem:[%s4377_s5 + $0x1e8] sm:$0xff]  ;;  %v2114_v23 = vpack.c.bf16 %v519_v14, %v512_v13  ;;  %v533_v28 = vld [vmem:[%s4377_s5 + $0x218] sm:$0xff]  ;;  %v570_v13 = vld [vmem:[%s4377_s5 + $0x340] sm:$0xff] }
 0x208   :  { %v577_v14 = vld [vmem:[%s4377_s5 + $0x378] sm:$0xff] }
 0x209   :  { %1959 = vmatpush1.bf16.msra.mxu1 %v1958_v39  ;;  %2087 = vmatpush1.bf16.msra.mxu0 %v2086_v42  ;;  %v2102_v39 = vpack.c.bf16 %v477_v32, %v470_v31  ;;  %v2230_v42 = vpack.c.bf16 %v479_v27, %v472_v34  ;;  %v528_v31 = vld [vmem:[%s4377_s5 + $0x1f0] sm:$0xff]  ;;  %v535_v32 = vld [vmem:[%s4377_s5 + $0x228] sm:$0xff]  ;;  %v654_v27 = vld [vmem:[%s4377_s5 + $0x5e0] sm:$0xff] }
 0x20a   :  { %1961 = vmatprep.subr.bf16.mxu1 %v1960_v45  ;;  %2089 = vmatprep.subr.bf16.mxu0 %v2088_v7  ;;  %v3779_v45 = vmax.f32 %v456_v33, 0.0  ;;  %v2104_v7 = vpack.c.bf16 %v492_v36, %v485_v35  ;;  %v541_v33 = vld [vmem:[%s4377_s5 + $0x258] sm:$0xff]  ;;  %v548_v34 = vld [vmem:[%s4377_s5 + $0x290] sm:$0xff]  ;;  %v2246_v40 = vpack.c.bf16 %v535_v32, %v528_v31  ;;  %v822_v31 = vld [vmem:[%s4377_s5 + $0xb20] sm:$0xff] }
 0x20b   :  { %v661_v35 = vld [vmem:[%s4377_s5 + $0x618] sm:$0xff] }
 0x20c   :  { %v829_v32 = vld [vmem:[%s4377_s5 + $0xb58] sm:$0xff] }
 0x20d   :  { %1963 = vmatpush1.bf16.msra.mxu1 %v1962_v55  ;;  %2091 = vmatpush1.bf16.msra.mxu0 %v2090_v56  ;;  %v3803_v55 = vmax.f32 %v454_v38, 0.0  ;;  %v2106_v56 = vpack.c.bf16 %v491_v44, %v484_v43  ;;  %v547_v38 = vld [vmem:[%s4377_s5 + $0x288] sm:$0xff]  ;;  %v542_v43 = vld [vmem:[%s4377_s5 + $0x260] sm:$0xff]  ;;  %v549_v44 = vld [vmem:[%s4377_s5 + $0x298] sm:$0xff] }
 0x20e   :  { %1965 = vmatprep.subr.bf16.mxu1 %v1964_v0  ;;  %2093 = vmatprep.subr.bf16.mxu0 %v2092_v2  ;;  %v505_v0 = vld [vmem:[%s4377_s5 + $0x138] sm:$0xff]  ;;  %v2108_v2 = vpack.c.bf16 %v506_v51, %v499_v50  ;;  %v2122_v50 = vpack.c.bf16 %v547_v38, %v540_v54  ;;  %v2250_v51 = vpack.c.bf16 %v549_v44, %v542_v43  ;;  %v836_v43 = vld [vmem:[%s4377_s5 + $0xb90] sm:$0xff]  ;;  %v843_v44 = vld [vmem:[%s4377_s5 + $0xbc8] sm:$0xff] }
 0x20f   :  { %v2264_v54 = vpack.c.bf16 %v829_v32, %v822_v31  ;;  %v717_v38 = vld [vmem:[%s4377_s5 + $0x7d8] sm:$0xff]  ;;  %v652_v32 = vld [vmem:[%s4377_s5 + $0x5d0] sm:$0xff] }
 0x211   :  { %1967 = vmatpush1.bf16.msra.mxu1 %v1966_v10  ;;  %2095 = vmatpush1.bf16.msra.mxu0 %v2094_v11  ;;  %v633_v10 = vld [vmem:[%s4377_s5 + $0x538] sm:$0xff]  ;;  %v2110_v11 = vpack.c.bf16 %v505_v0, %v498_v62  ;;  %v556_v62 = vld [vmem:[%s4377_s5 + $0x2d0] sm:$0xff]  ;;  %v563_v0 = vld [vmem:[%s4377_s5 + $0x308] sm:$0xff] }
 0x212   :  { %1969 = vmatprep.subr.bf16.mxu1 %v1968_v16  ;;  %2097 = vmatprep.subr.bf16.mxu0 %v2096_v17  ;;  %v2112_v16 = vpack.c.bf16 %v520_v8, %v513_v6  ;;  %v2240_v17 = vpack.c.bf16 %v633_v10, %v626_v9  ;;  %v2126_v6 = vpack.c.bf16 %v561_v53, %v554_v52  ;;  %v568_v9 = vld [vmem:[%s4377_s5 + $0x330] sm:$0xff]  ;;  %v575_v10 = vld [vmem:[%s4377_s5 + $0x368] sm:$0xff] }
 0x213   :  { %v2254_v8 = vpack.c.bf16 %v563_v0, %v556_v62  ;;  %v2268_v52 = vpack.c.bf16 %v843_v44, %v836_v43  ;;  %v731_v53 = vld [vmem:[%s4377_s5 + $0x848] sm:$0xff]  ;;  %v850_v62 = vld [vmem:[%s4377_s5 + $0xc00] sm:$0xff]  ;;  %v857_v0 = vld [vmem:[%s4377_s5 + $0xc38] sm:$0xff] }
 0x214   :  { %v666_v44 = vld [vmem:[%s4377_s5 + $0x640] sm:$0xff] }
 0x215   :  { %1971 = vmatpush1.bf16.msra.mxu1 %v1970_v24  ;;  %2099 = vmatpush1.bf16.msra.mxu0 %v2098_v26  ;;  %v526_v26 = vld [vmem:[%s4377_s5 + $0x1e0] sm:$0xff] }
 0x216   :  { %2101 = vmatprep.subr.bf16.mxu1 %v2100_v29  ;;  %2229 = vmatprep.subr.bf16.mxu0 %v2228_v30  ;;  %v2116_v29 = vpack.c.bf16 %v534_v20, %v527_v19  ;;  %v2244_v30 = vpack.c.bf16 %v647_v21, %v640_v22  ;;  %v2118_v36 = vpack.c.bf16 %v533_v28, %v526_v26  ;;  %v696_v26 = vld [vmem:[%s4377_s5 + $0x730] sm:$0xff]  ;;  %v703_v28 = vld [vmem:[%s4377_s5 + $0x768] sm:$0xff] }
 0x217   :  { %v2130_v19 = vpack.c.bf16 %v575_v10, %v568_v9  ;;  %v2258_v20 = vpack.c.bf16 %v577_v14, %v570_v13  ;;  %v2272_v9 = vpack.c.bf16 %v857_v0, %v850_v62  ;;  %v745_v10 = vld [vmem:[%s4377_s5 + $0x8b8] sm:$0xff]  ;;  %v864_v13 = vld [vmem:[%s4377_s5 + $0xc70] sm:$0xff]  ;;  %v871_v14 = vld [vmem:[%s4377_s5 + $0xca8] sm:$0xff] }
 0x218   :  { %1093 = vmatmul.mubr.f32.vlgmr.msra.gmra.mrb[4].mxu1 %v3770_v37  ;;  %1247 = vmatmul.mubr.f32.vlgmr.msra.gmra.mrb[8].mxu0 %v3770_v37  ;;  %v680_v0 = vld [vmem:[%s4377_s5 + $0x6b0] sm:$0xff] }
 0x219   :  { %1098 = vmatprep.mubr.f32.mxu1 %v3779_v45  ;;  %1252 = vmatprep.mubr.f32.mxu0 %v3779_v45 }
 0x21a   :  { %2103 = vmatpush1.bf16.msra.mxu1 %v2102_v39  ;;  %2231 = vmatpush3.bf16.msra.mxu0 %v2230_v42  ;;  %v2120_v39 = vpack.c.bf16 %v548_v34, %v541_v33  ;;  %v2248_v42 = vpack.c.bf16 %v661_v35, %v654_v27  ;;  %v2262_v34 = vpack.c.bf16 %v703_v28, %v696_v26  ;;  %v596_v35 = vld [vmem:[%s4377_s5 + $0x410] sm:$0xff]  ;;  %v878_v26 = vld [vmem:[%s4377_s5 + $0xce0] sm:$0xff]  ;;  %v885_v28 = vld [vmem:[%s4377_s5 + $0xd18] sm:$0xff] }
 0x21b   :  { %2105 = vmatprep.subr.bf16.mxu1 %v2104_v7  ;;  %2233 = vmatprep.subr.bf16.mxu0 %v2232_v48  ;;  %v555_v7 = vld [vmem:[%s4377_s5 + $0x2c8] sm:$0xff]  ;;  %v562_v48 = vld [vmem:[%s4377_s5 + $0x300] sm:$0xff] }
 0x21c   :  { %1099 = vmatmul.mubr.f32.gmra.mrb[6].mxu1 %v3803_v55  ;;  %1253 = vmatmul.mubr.f32.gmra.mrb[10].mxu0 %v3803_v55 }
 0x21d   :  { %1323 = vmatprep.mubr.f32.mxu1 %v3354_v41  ;;  %1477 = vmatprep.mubr.f32.mxu0 %v3354_v41  ;;  %v514_v41 = vld [vmem:[%s4377_s5 + $0x180] sm:$0xff] }
 0x21e   :  { %2107 = vmatpush1.bf16.msra.mxu1 %v2106_v56  ;;  %2235 = vmatpush3.bf16.msra.mxu0 %v2234_v57  ;;  %v2242_v24 = vpack.c.bf16 %v521_v18, %v514_v41  ;;  %v2124_v56 = vpack.c.bf16 %v562_v48, %v555_v7  ;;  %v2252_v57 = vpack.c.bf16 %v675_v49, %v668_v46  ;;  %v808_v41 = vld [vmem:[%s4377_s5 + $0xab0] sm:$0xff]  ;;  %v815_v18 = vld [vmem:[%s4377_s5 + $0xae8] sm:$0xff]  ;;  %v610_v49 = vld [vmem:[%s4377_s5 + $0x480] sm:$0xff] }
 0x21f   :  { %2109 = vmatprep.subr.bf16.mxu1 %v2108_v2  ;;  %2237 = vmatprep.subr.bf16.mxu0 %v2236_v3  ;;  %v569_v2 = vld [vmem:[%s4377_s5 + $0x338] sm:$0xff]  ;;  %v576_v3 = vld [vmem:[%s4377_s5 + $0x370] sm:$0xff]  ;;  %v2260_v21 = vpack.c.bf16 %v815_v18, %v808_v41  ;;  %v638_v18 = vld [vmem:[%s4377_s5 + $0x560] sm:$0xff] }
 0x222   :  { %2111 = vmatpush1.bf16.msra.mxu1 %v2110_v11  ;;  %2239 = vmatpush3.bf16.msra.mxu0 %v2238_v12  ;;  %v2128_v11 = vpack.c.bf16 %v576_v3, %v569_v2  ;;  %v2256_v12 = vpack.c.bf16 %v689_v5, %v682_v4  ;;  %v624_v5 = vld [vmem:[%s4377_s5 + $0x4f0] sm:$0xff] }
 0x223   :  { %2113 = vmatprep.subr.bf16.mxu1 %v2112_v16  ;;  %2241 = vmatprep.subr.bf16.mxu0 %v2240_v17  ;;  %v583_v16 = vld [vmem:[%s4377_s5 + $0x3a8] sm:$0xff]  ;;  %v590_v17 = vld [vmem:[%s4377_s5 + $0x3e0] sm:$0xff] }
 0x224   :  { %v2132_v22 = vpack.c.bf16 %v590_v17, %v583_v16 }
 0x226   :  { %2115 = vmatpush1.bf16.msra.mxu1 %v2114_v23  ;;  %2243 = vmatpush3.bf16.msra.mxu0 %v2242_v24  ;;  %v582_v23 = vld [vmem:[%s4377_s5 + $0x3a0] sm:$0xff]  ;;  %v589_v24 = vld [vmem:[%s4377_s5 + $0x3d8] sm:$0xff] }
 0x227   :  { %2117 = vmatprep.subr.bf16.mxu1 %v2116_v29  ;;  %2245 = vmatprep.subr.bf16.mxu0 %v2244_v30  ;;  %v597_v29 = vld [vmem:[%s4377_s5 + $0x418] sm:$0xff]  ;;  %v604_v30 = vld [vmem:[%s4377_s5 + $0x450] sm:$0xff]  ;;  %v2134_v33 = vpack.c.bf16 %v589_v24, %v582_v23 }
 0x228   :  { %v2136_v27 = vpack.c.bf16 %v604_v30, %v597_v29  ;;  %v653_v23 = vld [vmem:[%s4377_s5 + $0x5d8] sm:$0xff]  ;;  %v660_v24 = vld [vmem:[%s4377_s5 + $0x610] sm:$0xff] }
 0x229   :  { %v2152_v31 = vpack.c.bf16 %v660_v24, %v653_v23  ;;  %v729_v24 = vld [vmem:[%s4377_s5 + $0x838] sm:$0xff] }
 0x22a   :  { %2119 = vmatpush1.bf16.msra.mxu1 %v2118_v36  ;;  %2247 = vmatpush3.bf16.msra.mxu0 %v2246_v40  ;;  %v603_v36 = vld [vmem:[%s4377_s5 + $0x448] sm:$0xff]  ;;  %v710_v40 = vld [vmem:[%s4377_s5 + $0x7a0] sm:$0xff] }
 0x22b   :  { %2121 = vmatprep.subr.bf16.mxu1 %v2120_v39  ;;  %2249 = vmatprep.subr.bf16.mxu0 %v2248_v42  ;;  %v611_v39 = vld [vmem:[%s4377_s5 + $0x488] sm:$0xff]  ;;  %v618_v42 = vld [vmem:[%s4377_s5 + $0x4c0] sm:$0xff]  ;;  %v2138_v7 = vpack.c.bf16 %v603_v36, %v596_v35  ;;  %v2266_v48 = vpack.c.bf16 %v717_v38, %v710_v40  ;;  %v773_v35 = vld [vmem:[%s4377_s5 + $0x998] sm:$0xff] }
 0x22c   :  { %v2140_v46 = vpack.c.bf16 %v618_v42, %v611_v39  ;;  %v667_v36 = vld [vmem:[%s4377_s5 + $0x648] sm:$0xff]  ;;  %v674_v40 = vld [vmem:[%s4377_s5 + $0x680] sm:$0xff] }
 0x22d   :  { %v899_v38 = vld [vmem:[%s4377_s5 + $0xd88] sm:$0xff]  ;;  %v2156_v43 = vpack.c.bf16 %v674_v40, %v667_v36  ;;  %v772_v36 = vld [vmem:[%s4377_s5 + $0x990] sm:$0xff] }
 0x22e   :  { %2123 = vmatpush1.bf16.msra.mxu1 %v2122_v50  ;;  %2251 = vmatpush3.bf16.msra.mxu0 %v2250_v51  ;;  %v617_v50 = vld [vmem:[%s4377_s5 + $0x4b8] sm:$0xff]  ;;  %v724_v51 = vld [vmem:[%s4377_s5 + $0x810] sm:$0xff] }
 0x22f   :  { %2125 = vmatprep.subr.bf16.mxu1 %v2124_v56  ;;  %2253 = vmatprep.subr.bf16.mxu0 %v2252_v57  ;;  %v625_v56 = vld [vmem:[%s4377_s5 + $0x4f8] sm:$0xff]  ;;  %v632_v57 = vld [vmem:[%s4377_s5 + $0x530] sm:$0xff]  ;;  %v2142_v2 = vpack.c.bf16 %v617_v50, %v610_v49  ;;  %v2270_v3 = vpack.c.bf16 %v731_v53, %v724_v51  ;;  %v787_v49 = vld [vmem:[%s4377_s5 + $0xa08] sm:$0xff] }
 0x230   :  { %v2144_v4 = vpack.c.bf16 %v632_v57, %v625_v56  ;;  %v681_v50 = vld [vmem:[%s4377_s5 + $0x6b8] sm:$0xff]  ;;  %v688_v51 = vld [vmem:[%s4377_s5 + $0x6f0] sm:$0xff] }
 0x231   :  { %v913_v53 = vld [vmem:[%s4377_s5 + $0xdf8] sm:$0xff]  ;;  %v2160_v62 = vpack.c.bf16 %v688_v51, %v681_v50  ;;  %v800_v50 = vld [vmem:[%s4377_s5 + $0xa70] sm:$0xff] }
 0x232   :  { %2127 = vmatpush1.bf16.msra.mxu1 %v2126_v6  ;;  %2255 = vmatpush3.bf16.msra.mxu0 %v2254_v8  ;;  %v631_v6 = vld [vmem:[%s4377_s5 + $0x528] sm:$0xff]  ;;  %v738_v8 = vld [vmem:[%s4377_s5 + $0x880] sm:$0xff] }
 0x233   :  { %2129 = vmatprep.subr.bf16.mxu1 %v2128_v11  ;;  %2257 = vmatprep.subr.bf16.mxu0 %v2256_v12  ;;  %v639_v11 = vld [vmem:[%s4377_s5 + $0x568] sm:$0xff]  ;;  %v646_v12 = vld [vmem:[%s4377_s5 + $0x5a0] sm:$0xff]  ;;  %v2146_v16 = vpack.c.bf16 %v631_v6, %v624_v5  ;;  %v2274_v17 = vpack.c.bf16 %v745_v10, %v738_v8  ;;  %v801_v5 = vld [vmem:[%s4377_s5 + $0xa78] sm:$0xff] }
 0x234   :  { %v2148_v41 = vpack.c.bf16 %v646_v12, %v639_v11  ;;  %v695_v6 = vld [vmem:[%s4377_s5 + $0x728] sm:$0xff]  ;;  %v702_v8 = vld [vmem:[%s4377_s5 + $0x760] sm:$0xff] }
 0x235   :  { %v2164_v11 = vpack.c.bf16 %v702_v8, %v695_v6  ;;  %v694_v12 = vld [vmem:[%s4377_s5 + $0x720] sm:$0xff]  ;;  %v828_v6 = vld [vmem:[%s4377_s5 + $0xb50] sm:$0xff] }
 0x236   :  { %2131 = vmatpush1.bf16.msra.mxu1 %v2130_v19  ;;  %2259 = vmatpush3.bf16.msra.mxu0 %v2258_v20  ;;  %v645_v19 = vld [vmem:[%s4377_s5 + $0x598] sm:$0xff]  ;;  %v752_v20 = vld [vmem:[%s4377_s5 + $0x8f0] sm:$0xff] }
 0x237   :  { %2133 = vmatprep.subr.bf16.mxu1 %v2132_v22  ;;  %2261 = vmatprep.subr.bf16.mxu0 %v2260_v21  ;;  %v2276_v22 = vpack.c.bf16 %v871_v14, %v864_v13  ;;  %v759_v21 = vld [vmem:[%s4377_s5 + $0x928] sm:$0xff]  ;;  %v2150_v29 = vpack.c.bf16 %v645_v19, %v638_v18  ;;  %v701_v13 = vld [vmem:[%s4377_s5 + $0x758] sm:$0xff]  ;;  %v708_v18 = vld [vmem:[%s4377_s5 + $0x790] sm:$0xff] }
 0x238   :  { %v2278_v30 = vpack.c.bf16 %v759_v21, %v752_v20  ;;  %v709_v14 = vld [vmem:[%s4377_s5 + $0x798] sm:$0xff]  ;;  %v715_v19 = vld [vmem:[%s4377_s5 + $0x7c8] sm:$0xff] }
 0x239   :  { %1478 = vmatmul.mubr.f32.vlgmr.msra.gmra.mrb[12].mxu0 %v3361_v47  ;;  %v723_v20 = vld [vmem:[%s4377_s5 + $0x808] sm:$0xff]  ;;  %v2170_v21 = vpack.c.bf16 %v715_v19, %v708_v18  ;;  %v849_v18 = vld [vmem:[%s4377_s5 + $0xbf8] sm:$0xff]  ;;  %v856_v19 = vld [vmem:[%s4377_s5 + $0xc30] sm:$0xff] }
 0x23a   :  { %2135 = vmatpush1.bf16.msra.mxu1 %v2134_v33  ;;  %1482 = vmatprep.mubr.f32.mxu0 %v3393_v1  ;;  %v659_v33 = vld [vmem:[%s4377_s5 + $0x608] sm:$0xff] }
 0x23b   :  { %2263 = vmatpush3.bf16.msra.mxu0 %v2262_v34  ;;  %2137 = vmatprep.subr.bf16.mxu1 %v2136_v27  ;;  %v766_v34 = vld [vmem:[%s4377_s5 + $0x960] sm:$0xff]  ;;  %v2280_v27 = vpack.c.bf16 %v885_v28, %v878_v26  ;;  %v2154_v39 = vpack.c.bf16 %v659_v33, %v652_v32  ;;  %v744_v26 = vld [vmem:[%s4377_s5 + $0x8b0] sm:$0xff] }
 0x23c   :  { %2265 = vmatprep.subr.bf16.mxu0 %v2264_v54  ;;  %v892_v54 = vld [vmem:[%s4377_s5 + $0xd50] sm:$0xff]  ;;  %v2282_v42 = vpack.c.bf16 %v773_v35, %v766_v34  ;;  %v750_v34 = vld [vmem:[%s4377_s5 + $0x8e0] sm:$0xff]  ;;  %v765_v35 = vld [vmem:[%s4377_s5 + $0x958] sm:$0xff] }
 0x23d   :  { %1483 = vmatmul.mubr.f32.gmra.mrb[14].mxu0 %v3380_v60 }
 0x23e   :  { %2139 = vmatpush1.bf16.msra.mxu1 %v2138_v7  ;;  %1552 = vmatprep.mubr.f32.mxu0 %v3421_v15  ;;  %v673_v7 = vld [vmem:[%s4377_s5 + $0x678] sm:$0xff] }
 0x23f   :  { %2267 = vmatpush3.bf16.msra.mxu0 %v2266_v48  ;;  %2141 = vmatprep.subr.bf16.mxu1 %v2140_v46  ;;  %v780_v48 = vld [vmem:[%s4377_s5 + $0x9d0] sm:$0xff]  ;;  %v2284_v46 = vpack.c.bf16 %v899_v38, %v892_v54  ;;  %v2158_v56 = vpack.c.bf16 %v673_v7, %v666_v44  ;;  %v2184_v54 = vpack.c.bf16 %v772_v36, %v765_v35 }
 0x240   :  { %2269 = vmatprep.subr.bf16.mxu0 %v2268_v52  ;;  %v906_v52 = vld [vmem:[%s4377_s5 + $0xdc0] sm:$0xff]  ;;  %v2286_v57 = vpack.c.bf16 %v787_v49, %v780_v48  ;;  %v764_v38 = vld [vmem:[%s4377_s5 + $0x950] sm:$0xff]  ;;  %v793_v49 = vld [vmem:[%s4377_s5 + $0xa38] sm:$0xff] }
 0x241   :  { %v778_v48 = vld [vmem:[%s4377_s5 + $0x9c0] sm:$0xff] }
 0x242   :  { %2143 = vmatpush1.bf16.msra.mxu1 %v2142_v2  ;;  %v687_v2 = vld [vmem:[%s4377_s5 + $0x6e8] sm:$0xff] }
 0x243   :  { %2271 = vmatpush3.bf16.msra.mxu0 %v2270_v3  ;;  %2145 = vmatprep.subr.bf16.mxu1 %v2144_v4  ;;  %v794_v3 = vld [vmem:[%s4377_s5 + $0xa40] sm:$0xff]  ;;  %v2288_v4 = vpack.c.bf16 %v913_v53, %v906_v52  ;;  %v2192_v52 = vpack.c.bf16 %v800_v50, %v793_v49  ;;  %v792_v53 = vld [vmem:[%s4377_s5 + $0xa30] sm:$0xff] }
 0x244   :  { %2273 = vmatprep.subr.bf16.mxu0 %v2272_v9  ;;  %v2162_v9 = vpack.c.bf16 %v687_v2, %v680_v0  ;;  %v2290_v10 = vpack.c.bf16 %v801_v5, %v794_v3  ;;  %v806_v3 = vld [vmem:[%s4377_s5 + $0xaa0] sm:$0xff]  ;;  %v821_v5 = vld [vmem:[%s4377_s5 + $0xb18] sm:$0xff] }
 0x246   :  { %2147 = vmatpush1.bf16.msra.mxu1 %v2146_v16  ;;  %v716_v16 = vld [vmem:[%s4377_s5 + $0x7d0] sm:$0xff] }
 0x247   :  { %2275 = vmatpush3.bf16.msra.mxu0 %v2274_v17  ;;  %2149 = vmatprep.subr.bf16.mxu1 %v2148_v41  ;;  %v2166_v17 = vpack.c.bf16 %v701_v13, %v694_v12  ;;  %v2168_v41 = vpack.c.bf16 %v716_v16, %v709_v14  ;;  %v835_v12 = vld [vmem:[%s4377_s5 + $0xb88] sm:$0xff]  ;;  %v842_v13 = vld [vmem:[%s4377_s5 + $0xbc0] sm:$0xff] }
 0x248   :  { %2277 = vmatprep.subr.bf16.mxu0 %v2276_v22  ;;  %v730_v22 = vld [vmem:[%s4377_s5 + $0x840] sm:$0xff]  ;;  %v2204_v16 = vpack.c.bf16 %v842_v13, %v835_v12 }
 0x249   :  { %v2172_v23 = vpack.c.bf16 %v730_v22, %v723_v20  ;;  %v2208_v22 = vpack.c.bf16 %v856_v19, %v849_v18 }
 0x24a   :  { %2151 = vmatpush1.bf16.msra.mxu1 %v2150_v29 }
 0x24b   :  { %2279 = vmatpush3.bf16.msra.mxu0 %v2278_v30  ;;  %2153 = vmatprep.subr.bf16.mxu1 %v2152_v31  ;;  %v743_v30 = vld [vmem:[%s4377_s5 + $0x8a8] sm:$0xff] }
 0x24c   :  { %2281 = vmatprep.subr.bf16.mxu0 %v2280_v27  ;;  %v751_v31 = vld [vmem:[%s4377_s5 + $0x8e8] sm:$0xff]  ;;  %v757_v27 = vld [vmem:[%s4377_s5 + $0x918] sm:$0xff] }
 0x24d   :  { %v2182_v40 = vpack.c.bf16 %v757_v27, %v750_v34  ;;  %v891_v34 = vld [vmem:[%s4377_s5 + $0xd48] sm:$0xff]  ;;  %v898_v27 = vld [vmem:[%s4377_s5 + $0xd80] sm:$0xff] }
 0x24e   :  { %2155 = vmatpush1.bf16.msra.mxu1 %v2154_v39  ;;  %v771_v39 = vld [vmem:[%s4377_s5 + $0x988] sm:$0xff]  ;;  %v2220_v36 = vpack.c.bf16 %v898_v27, %v891_v34  ;;  %v938_v34 = vsub.s32 5, %v2916_v58 }
 0x24f   :  { %2283 = vmatpush3.bf16.msra.mxu0 %v2282_v42  ;;  %2157 = vmatprep.subr.bf16.mxu1 %v2156_v43  ;;  %v779_v42 = vld [vmem:[%s4377_s5 + $0x9c8] sm:$0xff]  ;;  %v786_v43 = vld [vmem:[%s4377_s5 + $0xa00] sm:$0xff]  ;;  %v2186_v44 = vpack.c.bf16 %v771_v39, %v764_v38  ;;  %v905_v38 = vld [vmem:[%s4377_s5 + $0xdb8] sm:$0xff] }
 0x250   :  { %2285 = vmatprep.subr.bf16.mxu0 %v2284_v46  ;;  %v2188_v7 = vpack.c.bf16 %v786_v43, %v779_v42  ;;  %v785_v46 = vld [vmem:[%s4377_s5 + $0x9f8] sm:$0xff]  ;;  %v912_v39 = vld [vmem:[%s4377_s5 + $0xdf0] sm:$0xff] }
 0x251   :  { %v2190_v51 = vpack.c.bf16 %v785_v46, %v778_v48  ;;  %v2224_v43 = vpack.c.bf16 %v912_v39, %v905_v38  ;;  %v4342_v46 = vld [vmem:[%s4378_s6] sm:$0x7f] }
 0x252   :  { %2159 = vmatpush1.bf16.msra.mxu1 %v2158_v56  ;;  %v799_v56 = vld [vmem:[%s4377_s5 + $0xa68] sm:$0xff]  ;;  %v919_v49 = vrot.slane %v4342_v46, %v2919_v59  ;;  %v927_v50 = vrot.slane %v4342_v46, %v294_v63 }
 0x253   :  { %2287 = vmatpush3.bf16.msra.mxu0 %v2286_v57  ;;  %2161 = vmatprep.subr.bf16.mxu1 %v2160_v62  ;;  %v807_v57 = vld [vmem:[%s4377_s5 + $0xaa8] sm:$0xff]  ;;  %v814_v62 = vld [vmem:[%s4377_s5 + $0xae0] sm:$0xff]  ;;  %v2194_v0 = vpack.c.bf16 %v799_v56, %v792_v53 }
 0x254   :  { %2289 = vmatprep.subr.bf16.mxu0 %v2288_v4  ;;  %v2196_v2 = vpack.c.bf16 %v814_v62, %v807_v57  ;;  %v813_v4 = vld [vmem:[%s4377_s5 + $0xad8] sm:$0xff] }
 0x255   :  { %v2198_v8 = vpack.c.bf16 %v813_v4, %v806_v3 }
 0x256   :  { %2163 = vmatpush1.bf16.msra.mxu1 %v2162_v9  ;;  %v2200_v9 = vpack.c.bf16 %v828_v6, %v821_v5 }
 0x257   :  { %2291 = vmatpush3.bf16.msra.mxu0 %v2290_v10  ;;  %2165 = vmatprep.subr.bf16.mxu1 %v2164_v11  ;;  %v820_v10 = vld [vmem:[%s4377_s5 + $0xb10] sm:$0xff]  ;;  %v827_v11 = vld [vmem:[%s4377_s5 + $0xb48] sm:$0xff] }
 0x258   :  { %v2202_v14 = vpack.c.bf16 %v827_v11, %v820_v10 }
 0x259   :  { %1324 = vmatmul.mubr.f32.vlgmr.msra.gmra.mrb[8].mxu1 %v3361_v47  ;;  %v722_v47 = vld [vmem:[%s4377_s5 + $0x800] sm:$0xff] }
 0x25a   :  { %1553 = vmatmul.mubr.f32.vlgmr.msra.gmra.mrb[16].mxu0 %v3770_v37  ;;  %1329 = vmatprep.mubr.f32.mxu1 %v3393_v1  ;;  %v737_v1 = vld [vmem:[%s4377_s5 + $0x878] sm:$0xff]  ;;  %v2174_v28 = vpack.c.bf16 %v729_v24, %v722_v47  ;;  %v863_v47 = vld [vmem:[%s4377_s5 + $0xc68] sm:$0xff]  ;;  %v870_v24 = vld [vmem:[%s4377_s5 + $0xca0] sm:$0xff] }
 0x25b   :  { %2167 = vmatpush1.bf16.msra.mxu1 %v2166_v17  ;;  %1557 = vmatprep.mubr.f32.mxu0 %v3779_v45  ;;  %v2176_v29 = vpack.c.bf16 %v744_v26, %v737_v1  ;;  %v834_v17 = vld [vmem:[%s4377_s5 + $0xb80] sm:$0xff]  ;;  %v2212_v26 = vpack.c.bf16 %v870_v24, %v863_v47 }
 0x25c   :  { %2169 = vmatprep.subr.bf16.mxu1 %v2168_v41  ;;  %v841_v41 = vld [vmem:[%s4377_s5 + $0xbb8] sm:$0xff] }
 0x25d   :  { %1330 = vmatmul.mubr.f32.gmra.mrb[10].mxu1 %v3380_v60  ;;  %v736_v60 = vld [vmem:[%s4377_s5 + $0x870] sm:$0xff]  ;;  %v2206_v20 = vpack.c.bf16 %v841_v41, %v834_v17 }
 0x25e   :  { %1558 = vmatmul.mubr.f32.gmra.mrb[18].mxu0 %v3803_v55  ;;  %1400 = vmatprep.mubr.f32.mxu1 %v3421_v15  ;;  %v758_v15 = vld [vmem:[%s4377_s5 + $0x920] sm:$0xff]  ;;  %v2178_v32 = vpack.c.bf16 %v743_v30, %v736_v60  ;;  %v877_v60 = vld [vmem:[%s4377_s5 + $0xcd8] sm:$0xff]  ;;  %v884_v30 = vld [vmem:[%s4377_s5 + $0xd10] sm:$0xff] }
 0x25f   :  { %2171 = vmatpush1.bf16.msra.mxu1 %v2170_v21  ;;  %v2180_v33 = vpack.c.bf16 %v758_v15, %v751_v31  ;;  %v848_v21 = vld [vmem:[%s4377_s5 + $0xbf0] sm:$0xff]  ;;  %v2216_v15 = vpack.c.bf16 %v884_v30, %v877_v60 }
 0x260   :  { %2173 = vmatprep.subr.bf16.mxu1 %v2172_v23  ;;  %v855_v23 = vld [vmem:[%s4377_s5 + $0xc28] sm:$0xff] }
 0x261   :  { %v2210_v1 = vpack.c.bf16 %v855_v23, %v848_v21 }
 0x263   :  { %2175 = vmatpush1.bf16.msra.mxu1 %v2174_v28  ;;  %v862_v28 = vld [vmem:[%s4377_s5 + $0xc60] sm:$0xff] }
 0x264   :  { %2177 = vmatprep.subr.bf16.mxu1 %v2176_v29  ;;  %v869_v29 = vld [vmem:[%s4377_s5 + $0xc98] sm:$0xff] }
 0x265   :  { %v2214_v31 = vpack.c.bf16 %v869_v29, %v862_v28 }
 0x267   :  { %2179 = vmatpush1.bf16.msra.mxu1 %v2178_v32  ;;  %v876_v32 = vld [vmem:[%s4377_s5 + $0xcd0] sm:$0xff] }
 0x268   :  { %2181 = vmatprep.subr.bf16.mxu1 %v2180_v33  ;;  %v883_v33 = vld [vmem:[%s4377_s5 + $0xd08] sm:$0xff] }
 0x269   :  { %v2218_v35 = vpack.c.bf16 %v883_v33, %v876_v32  ;;  %v934_v33 = vsub.s32 4, %v2916_v58 }
 0x26b   :  { %2183 = vmatpush1.bf16.msra.mxu1 %v2182_v40  ;;  %v890_v40 = vld [vmem:[%s4377_s5 + $0xd40] sm:$0xff]  ;;  %v935_v27 = vrot.slane %v4342_v46, %v934_v33 }
 0x26c   :  { %2185 = vmatprep.subr.bf16.mxu1 %v2184_v54  ;;  %v897_v54 = vld [vmem:[%s4377_s5 + $0xd78] sm:$0xff] }
 0x26d   :  { %v2222_v42 = vpack.c.bf16 %v897_v54, %v890_v40 }
 0x26f   :  { %2187 = vmatpush1.bf16.msra.mxu1 %v2186_v44  ;;  %v904_v44 = vld [vmem:[%s4377_s5 + $0xdb0] sm:$0xff] }
 0x270   :  { %2189 = vmatprep.subr.bf16.mxu1 %v2188_v7  ;;  %v911_v7 = vld [vmem:[%s4377_s5 + $0xde8] sm:$0xff]  ;;  %s2373_s5 = smov [#allocation2]  }
 0x271   :  { %v2226_v48 = vpack.c.bf16 %v911_v7, %v904_v44  ;;  %s1597_s6 = sshll.u32 %s2373_s5, 4  ;;  %s1598_s6 = int_to_ptr.vmem [resolvable:$true] %s1597_s6 }
 0x272   :  { %s2348_s2 = scalar_lea.vmem %s1598_s6, 1792  ;;  %p2353_p1 = scmp.lt.s32.totalorder %s1598_s6, %s1598_s6 }
 0x273   :  { %2191 = vmatpush1.bf16.msra.mxu1 %v2190_v51  ;;  %v923_v51 = vrot.slane %v4342_v46, %v2925_v61  ;;  %p2349_p0 = scmp.ne.s32.totalorder %s1598_s6, %s2348_s2  ;;  %p2354_p2 = scmp.lt.s32.totalorder %s2348_s2, %s2348_s2 }
 0x274   :  { %2193 = vmatprep.subr.bf16.mxu1 %v2192_v52 }
 0x275   :  { %p2355_p3 = por %p2354_p2, %p2353_p1 }
 0x277   :  { %2195 = vmatpush1.bf16.msra.mxu1 %v2194_v0  ;;  %p2356_p4 = pnand %p2355_p3, %p2349_p0 }
 0x278   :  { %2197 = vmatprep.subr.bf16.mxu1 %v2196_v2 }
 0x27b   :  { %2199 = vmatpush1.bf16.msra.mxu1 %v2198_v8 }
 0x27c   :  { %2201 = vmatprep.subr.bf16.mxu1 %v2200_v9 }
 0x27f   :  { %2203 = vmatpush1.bf16.msra.mxu1 %v2202_v14 }
 0x280   :  { %2205 = vmatprep.subr.bf16.mxu1 %v2204_v16 }
 0x283   :  { %2207 = vmatpush1.bf16.msra.mxu1 %v2206_v20 }
 0x284   :  { %2209 = vmatprep.subr.bf16.mxu1 %v2208_v22  ;;  %v942_v22 = vsub.s32 6, %v2916_v58 }
 0x286   :  { %v943_v21 = vrot.slane %v4342_v46, %v942_v22 }
 0x287   :  { %2211 = vmatpush1.bf16.msra.mxu1 %v2210_v1 }
 0x288   :  { %2213 = vmatprep.subr.bf16.mxu1 %v2212_v26 }
 0x28b   :  { %2215 = vmatpush1.bf16.msra.mxu1 %v2214_v31 }
 0x28c   :  { %2217 = vmatprep.subr.bf16.mxu1 %v2216_v15 }
 0x28f   :  { %2219 = vmatpush1.bf16.msra.mxu1 %v2218_v35  ;;  %v939_v35 = vrot.slane %v4342_v46, %v938_v34 }
 0x290   :  { %2221 = vmatprep.subr.bf16.mxu1 %v2220_v36 }
 0x293   :  { %2223 = vmatpush1.bf16.msra.mxu1 %v2222_v42 }
 0x294   :  { %2225 = vmatprep.subr.bf16.mxu1 %v2224_v43 }
 0x297   :  { %2227 = vmatpush1.bf16.msra.mxu1 %v2226_v48 }
 0x29a   :  { %1401 = vmatmul.mubr.f32.vlgmr.msra.gmra.mrb[8].mxu1 %v3770_v37  ;;  %v931_v37 = vrot.slane %v4342_v46, %v298_v25 }
 0x29b   :  { %1406 = vmatprep.mubr.f32.mxu1 %v3779_v45 }
 0x29e   :  { %1407 = vmatmul.mubr.f32.gmra.mrb[10].mxu1 %v3803_v55 }
 0x2eb   :  { %v1094_v45 = vpop.f32.mrb[4].mxu1  ;;  %v1248_v55 = vpop.f32.mrb[8].mxu0 }
 0x2ec   :  { %v2292_v52 = vadd.f32 %v1094_v45, %v919_v49  ;;  %v2296_v53 = vadd.f32 %v1248_v55, %v927_v50  ;;  %v1096_v56 = vpop.f32.mrb[5].mxu1  ;;  %v1250_v57 = vpop.f32.mrb[9].mxu0 }
 0x2ed   :  { %v2293_v62 = vadd.f32 %v1096_v56, %v923_v51  ;;  %v2297_v0 = vadd.f32 %v1250_v57, %v931_v37 }
 0x2ee   :  { %2320 = vtanh.f32 %v2292_v52 }
 0x2ef   :  { %2322 = vtanh.f32 %v2296_v53  ;;  %v1100_v59 = vpop.f32.mrb[6].mxu1  ;;  %v1254_v2 = vpop.f32.mrb[10].mxu0 }
 0x2f0   :  { %2324 = vtanh.f32 %v2293_v62  ;;  %v2294_v63 = vadd.f32 %v1100_v59, %v919_v49  ;;  %v2298_v3 = vadd.f32 %v1254_v2, %v927_v50  ;;  %v1102_v61 = vpop.f32.mrb[7].mxu1  ;;  %v1256_v4 = vpop.f32.mrb[11].mxu0 }
 0x2f1   :  { %2326 = vtanh.f32 %v2297_v0  ;;  %v2295_v5 = vadd.f32 %v1102_v61, %v923_v51  ;;  %v2299_v25 = vadd.f32 %v1256_v4, %v931_v37 }
 0x2f2   :  { %2328 = vtanh.f32 %v2294_v63 }
 0x2f3   :  { %2330 = vtanh.f32 %v2298_v3 }
 0x2f4   :  { %2332 = vtanh.f32 %v2295_v5 }
 0x2f5   :  { %2334 = vtanh.f32 %v2299_v25 }
 0x2f8   :  { %v2321_v6 = vpop.eup %2320 }
 0x2f9   :  { %v2323_v8 = vpop.eup %2322  ;;  %1577 = vst [vmem:[#allocation2] sm:$0xff] %v2321_v6 }
 0x2fa   :  { %v2325_v9 = vpop.eup %2324  ;;  %1579 = vst [vmem:[#allocation2 + $0x10] sm:$0xff] %v2323_v8 }
 0x2fb   :  { %v2327_v10 = vpop.eup %2326  ;;  %1578 = vst [vmem:[#allocation2 + $0x8] sm:$0xff] %v2325_v9 }
 0x2fc   :  { %v2329_v11 = vpop.eup %2328  ;;  %1580 = vst [vmem:[#allocation2 + $0x18] sm:$0xff] %v2327_v10 }
 0x2fd   :  { %v2331_v12 = vpop.eup %2330  ;;  %1585 = vst [vmem:[#allocation2 + $0x38] sm:$0xff] %v2329_v11 }
 0x2fe   :  { %v2333_v13 = vpop.eup %2332  ;;  %1587 = vst [vmem:[#allocation2 + $0x48] sm:$0xff] %v2331_v12 }
 0x2ff   :  { %v2335_v14 = vpop.eup %2334  ;;  %1586 = vst [vmem:[#allocation2 + $0x40] sm:$0xff] %v2333_v13 }
 0x300   :  { %1588 = vst [vmem:[#allocation2 + $0x50] sm:$0xff] %v2335_v14 }
 0x30c   :  { %v1640_v16 = vpop.f32.mrb[12].mxu0 }
 0x30d   :  { %v1641_v17 = vpop.f32.mrb[13].mxu0 }
 0x30e   :  { %v1642_v41 = vadd.f32 %v1641_v17, %v1640_v16 }
 0x310   :  { %v1643_v18 = vpop.f32.mrb[14].mxu0  ;;  %v1480_v24 = vadd.f32 %v1642_v41, %v943_v21 }
 0x311   :  { %v1644_v19 = vpop.f32.mrb[15].mxu0 }
 0x312   :  { %v1645_v20 = vadd.f32 %v1644_v19, %v1643_v18 }
 0x314   :  { %v1485_v60 = vadd.f32 %v1645_v20, %v943_v21 }
 0x32d   :  { %v1678_v23 = vpop.f32.mrb[16].mxu0 }
 0x32e   :  { %v1679_v47 = vpop.f32.mrb[17].mxu0 }
 0x32f   :  { %v1680_v1 = vadd.f32 %v1679_v47, %v1678_v23 }
 0x331   :  { %v1555_v26 = vadd.f32 %v1680_v1, %v1480_v24  ;;  %v1681_v28 = vpop.f32.mrb[18].mxu0 }
 0x332   :  { %v1682_v29 = vpop.f32.mrb[19].mxu0 }
 0x333   :  { %2336 = vtanh.f32 %v1555_v26  ;;  %v1683_v30 = vadd.f32 %v1682_v29, %v1681_v28 }
 0x335   :  { %v1560_v31 = vadd.f32 %v1683_v30, %v1485_v60 }
 0x337   :  { %2338 = vtanh.f32 %v1560_v31 }
 0x33d   :  { %v2337_v15 = vpop.eup %2336 }
 0x33e   :  { %1584 = vst.msk [vmem:[#allocation2 + $0x30] sm:$0xff] %vm1583_vm0, %v2337_v15 }
 0x341   :  { %v2339_v32 = vpop.eup %2338 }
 0x342   :  { %1591 = vst.msk [vmem:[#allocation2 + $0x68] sm:$0xff] %vm1583_vm0, %v2339_v32 }
 0x36d   :  { %v1402_v36 = vpop.f32.mrb[8].mxu1 }
 0x36e   :  { %v2300_v40 = vadd.f32 %v1402_v36, %v935_v27  ;;  %v1404_v54 = vpop.f32.mrb[9].mxu1 }
 0x36f   :  { %v2301_v38 = vadd.f32 %v1404_v54, %v939_v35 }
 0x370   :  { %2340 = vtanh.f32 %v2300_v40 }
 0x371   :  { %2342 = vtanh.f32 %v2301_v38  ;;  %v1408_v39 = vpop.f32.mrb[10].mxu1 }
 0x372   :  { %v2302_v42 = vadd.f32 %v1408_v39, %v935_v27  ;;  %v1410_v43 = vpop.f32.mrb[11].mxu1 }
 0x373   :  { %v2303_v44 = vadd.f32 %v1410_v43, %v939_v35 }
 0x374   :  { %2344 = vtanh.f32 %v2302_v42 }
 0x375   :  { %2346 = vtanh.f32 %v2303_v44 }
 0x37a   :  { %v2341_v7 = vpop.eup %2340 }
 0x37b   :  { %v2343_v58 = vpop.eup %2342  ;;  %1581 = vst [vmem:[#allocation2 + $0x20] sm:$0xff] %v2341_v7 }
 0x37c   :  { %1582 = vst [vmem:[#allocation2 + $0x28] sm:$0xff] %v2343_v58 }
 0x37e   :  { %v2345_v48 = vpop.eup %2344 }
 0x37f   :  { %v2347_v46 = vpop.eup %2346  ;;  %1589 = vst [vmem:[#allocation2 + $0x58] sm:$0xff] %v2345_v48 }
 0x380   :  { %1590 = vst [vmem:[#allocation2 + $0x60] sm:$0xff] %v2347_v46 }
 0x381   :  { %2359 = shalt.err (!%p2356_p4)
}
 0x382   :  { %s2360_s24 = scalar_lea.hbm %s4379_s7, 1792 }
 0x383   :  { %p2361_p5 = scmp.ne.s32.totalorder %s4379_s7, %s2360_s24  ;;  %p2364_p6 = scmp.lt.u32.totalorder %s2360_s24, %s4379_s7 }
 0x385   :  { %p2366_p7 = pnand %p2364_p6, %p2361_p5 }
 0x387   :  { %2369 = shalt.err (!%p2366_p7)
}
 0x388   :  { %s2374_s29 = smov 896   ;;  %s2375_s30 = smov 56  }
 0x389   :  { %1603 = dma.vmem_to_hbm [thread:$0]  %s1598_s6, 1792, %s4379_s7, [#allocation3], %s2374_s29, %s2374_s29, %s2375_s30  }
 0x38a   :  { %2370 = dma.done.wait [#allocation3], 1792  }
 0x38b   :  { %2371 = vsyncadd [#allocation3], 4294965504 }
 0x38c   :  { %1607 = vsyncpa [#allocation3], 1 }

</bundles_post_ra>
